<compile_context>
chip_gen: v7x
topology: tpu7x:2x2x1
jax: 0.10.0
libtpu: 0.0.40
codegen_flags: <defaults>
</compile_context>

<pallas_src>
import functools

import jax
import jax.numpy as jnp
from jax.experimental import pallas as pl
from jax.experimental.pallas import tpu as pltpu

# ----------------------------- configuration -----------------------------
B = 8            # batch
D_IN = 16        # input_size  (== state dim, u is None)
D_OUT = 16       # output_size (must equal state dim for the ODE)
H_ENC = 32       # enc_hidden_size
H_REC = 32       # rec_hidden_size
H_DEC = 32       # dec_hidden_size
T_STEPS = 9      # len(ts) -> 8 Euler steps
N_STEPS = T_STEPS - 1
# TODO(synk): only rec_depth == 1 (single GRU layer) and u=None are implemented;
# the reference module also supports stacked GRU layers and a control input u.


# ------------------------------ Pallas kernel -----------------------------
def _recnode_traj_kernel(
    dts_ref,                        # (N_STEPS,) f32 in SMEM: per-step dt
    x0_ref,                         # (B, D_IN)
    ew1_ref, eb1_ref,               # encoder layer 1 (input norm folded in)
    wg_ref, bg_ref,                 # fused GRU projection (H_ENC+H_REC, 4H)
    dw1_ref, db1_ref,               # decoder layer 1
    dw2_ref, db2_ref,               # decoder output (output de-norm folded in)
    traj_ref,                       # OUT: (B, N_STEPS*D_IN), lane-dense
    eh_ref,                         # scratch: (B, H_ENC+H_REC) = [enc_out | h]
):
    f32 = jnp.float32
    H = H_REC

    # Hoist weight loads and bias broadcasts out of the time loop (no CSE of
    # broadcast_in_dim / repeated ref loads across iterations otherwise).
    ew1 = ew1_ref[...]
    eb1 = jnp.broadcast_to(eb1_ref[...], (B, H_ENC))
    wg = wg_ref[...]
    bg = jnp.broadcast_to(bg_ref[...], (B, 4 * H))
    dw1 = dw1_ref[...]
    db1 = jnp.broadcast_to(db1_ref[...], (B, H_DEC))
    dw2 = dw2_ref[...]
    db2 = jnp.broadcast_to(db2_ref[...], (B, D_OUT))

    x = x0_ref[...]                                   # current state (B, D_IN)
    h = jnp.zeros((B, H), f32)                        # init_hidden_state
    eh_ref[...] = jnp.zeros((B, H_ENC + H), f32)      # [enc_out | h], h0 = 0

    # Statically unrolled time loop: everything stays in vregs / VMEM.
    for t in range(N_STEPS):
        # encoder layer 1 (input normalization pre-folded into ew1/eb1)
        e = jnp.tanh(jnp.dot(x, ew1, preferred_element_type=f32) + eb1)
        eh_ref[:, 0:H_ENC] = e

        # fused GRU projection: ONE MXU call -> [i_r+h_r | i_z+h_z | i_n | h_n]
        g = jnp.dot(eh_ref[...], wg, preferred_element_type=f32) + bg
        s = jax.nn.sigmoid(g[:, 0:2 * H])             # one EUP pass for r and z
        r = s[:, 0:H]
        zg = s[:, H:2 * H]
        n = jnp.tanh(g[:, 2 * H:3 * H] + r * g[:, 3 * H:4 * H])
        h = (1.0 - zg) * n + zg * h
        eh_ref[:, H_ENC:H_ENC + H] = h                # stash h for next step

        # decoder (output de-normalization pre-folded into dw2/db2)
        d = jnp.tanh(jnp.dot(h, dw1, preferred_element_type=f32) + db1)
        dz = jnp.dot(d, dw2, preferred_element_type=f32) + db2

        # explicit Euler step
        x = x + dts_ref[t] * dz
        traj_ref[:, t * D_IN:(t + 1) * D_IN] = x


# -------------------------- weight folding (one-time) ----------------------
def fold_params(params):
    """Fold normalization layers and the encoder output Linear into adjacent
    weights, and build the fused GRU projection with columns [r | z | i_n | h_n]."""
    f32 = jnp.float32
    H = H_REC

    # (a) input normalization folded into encoder layer 1
    inv_s = 1.0 / params["input_scale"]                       # (1, D_IN)
    ew1 = params["enc_w1"] * inv_s.reshape(D_IN, 1)           # (D_IN, H_ENC)
    eb1 = params["enc_b1"] - (params["input_loc"] * inv_s) @ params["enc_w1"]

    # (b) encoder output Linear folded into the GRU input projection
    w_eg = params["enc_w2"] @ params["gru_wih"]               # (H_ENC, 3H)
    b_eg = params["enc_b2"] @ params["gru_wih"] + params["gru_bih"]  # (1, 3H)
    whh, bhh = params["gru_whh"], params["gru_bhh"]

    # (c) fused GRU weight; h-rows of the i_n block and e-rows of the h_n block
    #     are zero so torch's n = tanh(i_n + r*(h@Whh_n + b_hn)) is exact.
    top = jnp.concatenate(
        [w_eg[:, 0:2 * H], w_eg[:, 2 * H:3 * H], jnp.zeros((H_ENC, H), f32)], axis=1)
    bot = jnp.concatenate(
        [whh[:, 0:2 * H], jnp.zeros((H_REC, H), f32), whh[:, 2 * H:3 * H]], axis=1)
    wg = jnp.concatenate([top, bot], axis=0)                  # (H_ENC+H_REC, 4H)
    bg = jnp.concatenate(
        [b_eg[:, 0:2 * H] + bhh[:, 0:2 * H], b_eg[:, 2 * H:3 * H], bhh[:, 2 * H:3 * H]],
        axis=1)                                               # (1, 4H)

    # (d) output de-normalization folded into the decoder output layer
    dw2 = params["dec_w2"] * params["output_scale"]           # (H_DEC, D_OUT)
    db2 = params["dec_b2"] * params["output_scale"] + params["output_loc"]

    return dict(ew1=ew1.astype(f32), eb1=eb1.astype(f32),
                wg=wg.astype(f32), bg=bg.astype(f32),
                dw1=params["dec_w1"], db1=params["dec_b1"],
                dw2=dw2.astype(f32), db2=db2.astype(f32))


# --------------------------- integration wrapper ---------------------------
def recnode_integrate(x0, ts, params):
    """Euler integration on the grid `ts` (u=None, reset_hidden=True).
    Returns pred_x of shape (B, len(ts), D_IN), matching integrate(...)."""
    fp = fold_params(params)
    dts = (ts[1:] - ts[:-1]).astype(jnp.float32)              # (N_STEPS,)

    vmem = pl.BlockSpec(memory_space=pltpu.MemorySpace.VMEM)
    smem = pl.BlockSpec(memory_space=pltpu.MemorySpace.SMEM)

    traj = pl.pallas_call(
        _recnode_traj_kernel,
        out_shape=jax.ShapeDtypeStruct((B, N_STEPS * D_IN), jnp.float32),
        in_specs=[smem] + [vmem] * 9,
        out_specs=vmem,
        scratch_shapes=[pltpu.VMEM((B, H_ENC + H_REC), jnp.float32)],
    )(dts, x0,
      fp["ew1"], fp["eb1"], fp["wg"], fp["bg"],
      fp["dw1"], fp["db1"], fp["dw2"], fp["db2"])

    xs = traj.reshape(B, N_STEPS, D_IN)                       # (B, T-1, D)
    return jnp.concatenate([x0[:, None, :], xs], axis=1)      # (B, T, D)


# ------------------------------ parameter init -----------------------------
def init_params(key):
    keys = jax.random.split(key, 8)

    def w(k, shape, scale=0.1):
        return (scale * jax.random.normal(k, shape)).astype(jnp.float32)

    params = {
        # normalization buffers (zeros / ones, as registered in __init__)
        "input_loc": jnp.zeros((1, D_IN), jnp.float32),
        "input_scale": jnp.ones((1, D_IN), jnp.float32),
        "output_loc": jnp.zeros((1, D_OUT), jnp.float32),
        "output_scale": jnp.ones((1, D_OUT), jnp.float32),
        # encoder: FCtanh(D_IN, H_ENC) + Linear(H_ENC, H_REC)
        "enc_w1": w(keys[0], (D_IN, H_ENC)),
        "enc_b1": w(keys[1], (1, H_ENC), 0.01),
        "enc_w2": w(keys[2], (H_ENC, H_REC)),
        "enc_b2": jnp.zeros((1, H_REC), jnp.float32),
        # GRU (single layer), gate order (r, z, n) along the 3*H axis
        "gru_wih": w(keys[3], (H_REC, 3 * H_REC)),
        "gru_whh": w(keys[4], (H_REC, 3 * H_REC)),
        "gru_bih": jnp.zeros((1, 3 * H_REC), jnp.float32),
        "gru_bhh": jnp.zeros((1, 3 * H_REC), jnp.float32),
        # decoder: FCtanh(H_REC, H_DEC) + Linear(H_DEC, D_OUT)
        "dec_w1": w(keys[5], (H_REC, H_DEC)),
        "dec_b1": w(keys[6], (1, H_DEC), 0.01),
        "dec_w2": w(keys[7], (H_DEC, D_OUT)),
        "dec_b2": jnp.zeros((1, D_OUT), jnp.float32),
    }
    return params


# ------------------------- pure-JAX reference (unfused) ---------------------
def recnode_reference(x0, ts, params):
    hp = jax.lax.Precision.HIGHEST
    H = H_REC
    h = jnp.zeros((B, H), jnp.float32)
    x = x0
    outs = [x0]
    for t in range(N_STEPS):
        xn = (x - params["input_loc"]) / params["input_scale"]
        e = jnp.tanh(jnp.dot(xn, params["enc_w1"], precision=hp) + params["enc_b1"])
        e = jnp.dot(e, params["enc_w2"], precision=hp) + params["enc_b2"]
        gi = jnp.dot(e, params["gru_wih"], precision=hp) + params["gru_bih"]
        gh = jnp.dot(h, params["gru_whh"], precision=hp) + params["gru_bhh"]
        r = jax.nn.sigmoid(gi[:, 0:H] + gh[:, 0:H])
        zg = jax.nn.sigmoid(gi[:, H:2 * H] + gh[:, H:2 * H])
        n = jnp.tanh(gi[:, 2 * H:] + r * gh[:, 2 * H:])
        h = (1.0 - zg) * n + zg * h
        d = jnp.tanh(jnp.dot(h, params["dec_w1"], precision=hp) + params["dec_b1"])
        out = jnp.dot(d, params["dec_w2"], precision=hp) + params["dec_b2"]
        dz = params["output_scale"] * out + params["output_loc"]
        x = x + (ts[t + 1] - ts[t]) * dz
        outs.append(x)
    return jnp.stack(outs, axis=1)


# ---------------------------------- main -----------------------------------
if __name__ == "__main__":
    key = jax.random.PRNGKey(0)
    k_x, k_p = jax.random.split(key)

    params = init_params(k_p)
    x0 = jax.random.normal(k_x, (B, D_IN), jnp.float32)          # initial state
    ts = jnp.arange(T_STEPS, dtype=jnp.float32)                  # step_size = 1.0

    integrate = jax.jit(functools.partial(recnode_integrate, params=params))
    pred_x = integrate(x0, ts)
    jax.block_until_ready(pred_x)

    assert pred_x.shape == (B, T_STEPS, D_IN)
    assert bool(jnp.all(jnp.isfinite(pred_x)))

    ref = recnode_reference(x0, ts, params)
    assert bool(jnp.allclose(pred_x, ref, rtol=1e-2, atol=1e-2)), (
        "max abs err = %g" % float(jnp.max(jnp.abs(pred_x - ref))))
    print("KERNEL_OK")
</pallas_src>

<mosaic_0001>
module attributes {stable_mosaic.version = 11 : i64} {
  func.func @_recnode_traj_kernel(%arg0: memref<8xf32, #tpu.memory_space<smem>>, %arg1: memref<8x16xf32, #tpu.memory_space<vmem>>, %arg2: memref<16x32xf32, #tpu.memory_space<vmem>>, %arg3: memref<1x32xf32, #tpu.memory_space<vmem>>, %arg4: memref<64x128xf32, #tpu.memory_space<vmem>>, %arg5: memref<1x128xf32, #tpu.memory_space<vmem>>, %arg6: memref<32x32xf32, #tpu.memory_space<vmem>>, %arg7: memref<1x32xf32, #tpu.memory_space<vmem>>, %arg8: memref<32x16xf32, #tpu.memory_space<vmem>>, %arg9: memref<1x16xf32, #tpu.memory_space<vmem>>, %arg10: memref<8x128xf32, #tpu.memory_space<vmem>>, %arg11: memref<8x64xf32, #tpu.memory_space<vmem>>) attributes {dimension_semantics = [], scalar_prefetch = 0 : i64, scratch_operands = 1 : i64, tpu.core_type = #tpu.core_type<tc>} {
    %c0 = arith.constant 0 : index
    %c0_0 = arith.constant 0 : index
    %0 = vector.load %arg2[%c0, %c0_0] : memref<16x32xf32, #tpu.memory_space<vmem>>, vector<16x32xf32>
    %c0_1 = arith.constant 0 : index
    %c0_2 = arith.constant 0 : index
    %1 = vector.load %arg3[%c0_1, %c0_2] : memref<1x32xf32, #tpu.memory_space<vmem>>, vector<1x32xf32>
    %2 = vector.shape_cast %1 : vector<1x32xf32> to vector<1x32xf32>
    %3 = vector.broadcast %2 : vector<1x32xf32> to vector<8x32xf32>
    %c0_3 = arith.constant 0 : index
    %c0_4 = arith.constant 0 : index
    %4 = vector.load %arg4[%c0_3, %c0_4] : memref<64x128xf32, #tpu.memory_space<vmem>>, vector<64x128xf32>
    %c0_5 = arith.constant 0 : index
    %c0_6 = arith.constant 0 : index
    %5 = vector.load %arg5[%c0_5, %c0_6] : memref<1x128xf32, #tpu.memory_space<vmem>>, vector<1x128xf32>
    %6 = vector.shape_cast %5 : vector<1x128xf32> to vector<1x128xf32>
    %7 = vector.broadcast %6 : vector<1x128xf32> to vector<8x128xf32>
    %c0_7 = arith.constant 0 : index
    %c0_8 = arith.constant 0 : index
    %8 = vector.load %arg6[%c0_7, %c0_8] : memref<32x32xf32, #tpu.memory_space<vmem>>, vector<32x32xf32>
    %c0_9 = arith.constant 0 : index
    %c0_10 = arith.constant 0 : index
    %9 = vector.load %arg7[%c0_9, %c0_10] : memref<1x32xf32, #tpu.memory_space<vmem>>, vector<1x32xf32>
    %10 = vector.shape_cast %9 : vector<1x32xf32> to vector<1x32xf32>
    %11 = vector.broadcast %10 : vector<1x32xf32> to vector<8x32xf32>
    %c0_11 = arith.constant 0 : index
    %c0_12 = arith.constant 0 : index
    %12 = vector.load %arg8[%c0_11, %c0_12] : memref<32x16xf32, #tpu.memory_space<vmem>>, vector<32x16xf32>
    %c0_13 = arith.constant 0 : index
    %c0_14 = arith.constant 0 : index
    %13 = vector.load %arg9[%c0_13, %c0_14] : memref<1x16xf32, #tpu.memory_space<vmem>>, vector<1x16xf32>
    %14 = vector.shape_cast %13 : vector<1x16xf32> to vector<1x16xf32>
    %15 = vector.broadcast %14 : vector<1x16xf32> to vector<8x16xf32>
    %c0_15 = arith.constant 0 : index
    %c0_16 = arith.constant 0 : index
    %16 = vector.load %arg1[%c0_15, %c0_16] : memref<8x16xf32, #tpu.memory_space<vmem>>, vector<8x16xf32>
    %cst = arith.constant 0.000000e+00 : f32
    %17 = vector.broadcast %cst : f32 to vector<8x32xf32>
    %cst_17 = arith.constant 0.000000e+00 : f32
    %18 = vector.broadcast %cst_17 : f32 to vector<8x64xf32>
    %c0_18 = arith.constant 0 : index
    %c0_19 = arith.constant 0 : index
    %19 = vector.load %arg11[%c0_18, %c0_19] : memref<8x64xf32, #tpu.memory_space<vmem>>, vector<8x64xf32>
    tpu.vector_store %arg11[%c0_18, %c0_19], %18 {strides = array<i32>} : memref<8x64xf32, #tpu.memory_space<vmem>>, vector<8x64xf32>,
    %cst_20 = arith.constant dense<0.000000e+00> : vector<8x32xf32>
    %20 = tpu.matmul %16, %0, %cst_20 {dimension_numbers = #tpu.dot_dimension_numbers<[1], [0], [0], [1], [0, 0, 1, 1], [], []>} : vector<8x16xf32>, vector<16x32xf32>, vector<8x32xf32> -> vector<8x32xf32>
    %21 = arith.addf %20, %3 : vector<8x32xf32>
    %22 = math.tanh %21 : vector<8x32xf32>
    %c0_21 = arith.constant 0 : index
    %c0_22 = arith.constant 0 : index
    %23 = vector.load %arg11[%c0_21, %c0_22] : memref<8x64xf32, #tpu.memory_space<vmem>>, vector<8x32xf32>
    tpu.vector_store %arg11[%c0_21, %c0_22], %22 {strides = array<i32>} : memref<8x64xf32, #tpu.memory_space<vmem>>, vector<8x32xf32>,
    %c0_23 = arith.constant 0 : index
    %c0_24 = arith.constant 0 : index
    %24 = vector.load %arg11[%c0_23, %c0_24] : memref<8x64xf32, #tpu.memory_space<vmem>>, vector<8x64xf32>
    %cst_25 = arith.constant dense<0.000000e+00> : vector<8x128xf32>
    %25 = tpu.matmul %24, %4, %cst_25 {dimension_numbers = #tpu.dot_dimension_numbers<[1], [0], [0], [1], [0, 0, 1, 1], [], []>} : vector<8x64xf32>, vector<64x128xf32>, vector<8x128xf32> -> vector<8x128xf32>
    %26 = arith.addf %25, %7 : vector<8x128xf32>
    %27 = vector.extract_strided_slice %26 {offsets = [0, 0], sizes = [8, 64], strides = [1, 1]} : vector<8x128xf32> to vector<8x64xf32>
    %28 = arith.negf %27 : vector<8x64xf32>
    %29 = math.exp %28 : vector<8x64xf32>
    %cst_26 = arith.constant 1.000000e+00 : f32
    %30 = vector.broadcast %cst_26 : f32 to vector<8x64xf32>
    %31 = arith.addf %30, %29 : vector<8x64xf32>
    %32 = arith.divf %30, %31 : vector<8x64xf32>
    %33 = vector.extract_strided_slice %32 {offsets = [0, 0], sizes = [8, 32], strides = [1, 1]} : vector<8x64xf32> to vector<8x32xf32>
    %34 = vector.extract_strided_slice %32 {offsets = [0, 32], sizes = [8, 32], strides = [1, 1]} : vector<8x64xf32> to vector<8x32xf32>
    %35 = vector.extract_strided_slice %26 {offsets = [0, 64], sizes = [8, 32], strides = [1, 1]} : vector<8x128xf32> to vector<8x32xf32>
    %36 = vector.extract_strided_slice %26 {offsets = [0, 96], sizes = [8, 32], strides = [1, 1]} : vector<8x128xf32> to vector<8x32xf32>
    %37 = arith.mulf %33, %36 : vector<8x32xf32>
    %38 = arith.addf %35, %37 : vector<8x32xf32>
    %39 = math.tanh %38 : vector<8x32xf32>
    %cst_27 = arith.constant 1.000000e+00 : f32
    %40 = vector.broadcast %cst_27 : f32 to vector<8x32xf32>
    %41 = arith.subf %40, %34 : vector<8x32xf32>
    %42 = arith.mulf %41, %39 : vector<8x32xf32>
    %43 = arith.mulf %34, %17 : vector<8x32xf32>
    %44 = arith.addf %42, %43 : vector<8x32xf32>
    %c0_28 = arith.constant 0 : index
    %c32 = arith.constant 32 : index
    %45 = vector.load %arg11[%c0_28, %c32] : memref<8x64xf32, #tpu.memory_space<vmem>>, vector<8x32xf32>
    tpu.vector_store %arg11[%c0_28, %c32], %44 {strides = array<i32>} : memref<8x64xf32, #tpu.memory_space<vmem>>, vector<8x32xf32>,
    %cst_29 = arith.constant dense<0.000000e+00> : vector<8x32xf32>
    %46 = tpu.matmul %44, %8, %cst_29 {dimension_numbers = #tpu.dot_dimension_numbers<[1], [0], [0], [1], [0, 0, 1, 1], [], []>} : vector<8x32xf32>, vector<32x32xf32>, vector<8x32xf32> -> vector<8x32xf32>
    %47 = arith.addf %46, %11 : vector<8x32xf32>
    %48 = math.tanh %47 : vector<8x32xf32>
    %cst_30 = arith.constant dense<0.000000e+00> : vector<8x16xf32>
    %49 = tpu.matmul %48, %12, %cst_30 {dimension_numbers = #tpu.dot_dimension_numbers<[1], [0], [0], [1], [0, 0, 1, 1], [], []>} : vector<8x32xf32>, vector<32x16xf32>, vector<8x16xf32> -> vector<8x16xf32>
    %50 = arith.addf %49, %15 : vector<8x16xf32>
    %c0_31 = arith.constant 0 : index
    %51 = memref.load %arg0[%c0_31] : memref<8xf32, #tpu.memory_space<smem>>
    %52 = vector.broadcast %51 : f32 to vector<8x16xf32>
    %53 = arith.mulf %52, %50 : vector<8x16xf32>
    %54 = arith.addf %16, %53 : vector<8x16xf32>
    %c0_32 = arith.constant 0 : index
    %c0_33 = arith.constant 0 : index
    %55 = vector.load %arg10[%c0_32, %c0_33] : memref<8x128xf32, #tpu.memory_space<vmem>>, vector<8x16xf32>
    tpu.vector_store %arg10[%c0_32, %c0_33], %54 {strides = array<i32>} : memref<8x128xf32, #tpu.memory_space<vmem>>, vector<8x16xf32>,
    %cst_34 = arith.constant dense<0.000000e+00> : vector<8x32xf32>
    %56 = tpu.matmul %54, %0, %cst_34 {dimension_numbers = #tpu.dot_dimension_numbers<[1], [0], [0], [1], [0, 0, 1, 1], [], []>} : vector<8x16xf32>, vector<16x32xf32>, vector<8x32xf32> -> vector<8x32xf32>
    %57 = arith.addf %56, %3 : vector<8x32xf32>
    %58 = math.tanh %57 : vector<8x32xf32>
    %c0_35 = arith.constant 0 : index
    %c0_36 = arith.constant 0 : index
    %59 = vector.load %arg11[%c0_35, %c0_36] : memref<8x64xf32, #tpu.memory_space<vmem>>, vector<8x32xf32>
    tpu.vector_store %arg11[%c0_35, %c0_36], %58 {strides = array<i32>} : memref<8x64xf32, #tpu.memory_space<vmem>>, vector<8x32xf32>,
    %c0_37 = arith.constant 0 : index
    %c0_38 = arith.constant 0 : index
    %60 = vector.load %arg11[%c0_37, %c0_38] : memref<8x64xf32, #tpu.memory_space<vmem>>, vector<8x64xf32>
    %cst_39 = arith.constant dense<0.000000e+00> : vector<8x128xf32>
    %61 = tpu.matmul %60, %4, %cst_39 {dimension_numbers = #tpu.dot_dimension_numbers<[1], [0], [0], [1], [0, 0, 1, 1], [], []>} : vector<8x64xf32>, vector<64x128xf32>, vector<8x128xf32> -> vector<8x128xf32>
    %62 = arith.addf %61, %7 : vector<8x128xf32>
    %63 = vector.extract_strided_slice %62 {offsets = [0, 0], sizes = [8, 64], strides = [1, 1]} : vector<8x128xf32> to vector<8x64xf32>
    %64 = arith.negf %63 : vector<8x64xf32>
    %65 = math.exp %64 : vector<8x64xf32>
    %cst_40 = arith.constant 1.000000e+00 : f32
    %66 = vector.broadcast %cst_40 : f32 to vector<8x64xf32>
    %67 = arith.addf %66, %65 : vector<8x64xf32>
    %68 = arith.divf %66, %67 : vector<8x64xf32>
    %69 = vector.extract_strided_slice %68 {offsets = [0, 0], sizes = [8, 32], strides = [1, 1]} : vector<8x64xf32> to vector<8x32xf32>
    %70 = vector.extract_strided_slice %68 {offsets = [0, 32], sizes = [8, 32], strides = [1, 1]} : vector<8x64xf32> to vector<8x32xf32>
    %71 = vector.extract_strided_slice %62 {offsets = [0, 64], sizes = [8, 32], strides = [1, 1]} : vector<8x128xf32> to vector<8x32xf32>
    %72 = vector.extract_strided_slice %62 {offsets = [0, 96], sizes = [8, 32], strides = [1, 1]} : vector<8x128xf32> to vector<8x32xf32>
    %73 = arith.mulf %69, %72 : vector<8x32xf32>
    %74 = arith.addf %71, %73 : vector<8x32xf32>
    %75 = math.tanh %74 : vector<8x32xf32>
    %cst_41 = arith.constant 1.000000e+00 : f32
    %76 = vector.broadcast %cst_41 : f32 to vector<8x32xf32>
    %77 = arith.subf %76, %70 : vector<8x32xf32>
    %78 = arith.mulf %77, %75 : vector<8x32xf32>
    %79 = arith.mulf %70, %44 : vector<8x32xf32>
    %80 = arith.addf %78, %79 : vector<8x32xf32>
    %c0_42 = arith.constant 0 : index
    %c32_43 = arith.constant 32 : index
    %81 = vector.load %arg11[%c0_42, %c32_43] : memref<8x64xf32, #tpu.memory_space<vmem>>, vector<8x32xf32>
    tpu.vector_store %arg11[%c0_42, %c32_43], %80 {strides = array<i32>} : memref<8x64xf32, #tpu.memory_space<vmem>>, vector<8x32xf32>,
    %cst_44 = arith.constant dense<0.000000e+00> : vector<8x32xf32>
    %82 = tpu.matmul %80, %8, %cst_44 {dimension_numbers = #tpu.dot_dimension_numbers<[1], [0], [0], [1], [0, 0, 1, 1], [], []>} : vector<8x32xf32>, vector<32x32xf32>, vector<8x32xf32> -> vector<8x32xf32>
    %83 = arith.addf %82, %11 : vector<8x32xf32>
    %84 = math.tanh %83 : vector<8x32xf32>
    %cst_45 = arith.constant dense<0.000000e+00> : vector<8x16xf32>
    %85 = tpu.matmul %84, %12, %cst_45 {dimension_numbers = #tpu.dot_dimension_numbers<[1], [0], [0], [1], [0, 0, 1, 1], [], []>} : vector<8x32xf32>, vector<32x16xf32>, vector<8x16xf32> -> vector<8x16xf32>
    %86 = arith.addf %85, %15 : vector<8x16xf32>
    %c1 = arith.constant 1 : index
    %87 = memref.load %arg0[%c1] : memref<8xf32, #tpu.memory_space<smem>>
    %88 = vector.broadcast %87 : f32 to vector<8x16xf32>
    %89 = arith.mulf %88, %86 : vector<8x16xf32>
    %90 = arith.addf %54, %89 : vector<8x16xf32>
    %c0_46 = arith.constant 0 : index
    %c16 = arith.constant 16 : index
    %91 = vector.load %arg10[%c0_46, %c16] : memref<8x128xf32, #tpu.memory_space<vmem>>, vector<8x16xf32>
    tpu.vector_store %arg10[%c0_46, %c16], %90 {strides = array<i32>} : memref<8x128xf32, #tpu.memory_space<vmem>>, vector<8x16xf32>,
    %cst_47 = arith.constant dense<0.000000e+00> : vector<8x32xf32>
    %92 = tpu.matmul %90, %0, %cst_47 {dimension_numbers = #tpu.dot_dimension_numbers<[1], [0], [0], [1], [0, 0, 1, 1], [], []>} : vector<8x16xf32>, vector<16x32xf32>, vector<8x32xf32> -> vector<8x32xf32>
    %93 = arith.addf %92, %3 : vector<8x32xf32>
    %94 = math.tanh %93 : vector<8x32xf32>
    %c0_48 = arith.constant 0 : index
    %c0_49 = arith.constant 0 : index
    %95 = vector.load %arg11[%c0_48, %c0_49] : memref<8x64xf32, #tpu.memory_space<vmem>>, vector<8x32xf32>
    tpu.vector_store %arg11[%c0_48, %c0_49], %94 {strides = array<i32>} : memref<8x64xf32, #tpu.memory_space<vmem>>, vector<8x32xf32>,
    %c0_50 = arith.constant 0 : index
    %c0_51 = arith.constant 0 : index
    %96 = vector.load %arg11[%c0_50, %c0_51] : memref<8x64xf32, #tpu.memory_space<vmem>>, vector<8x64xf32>
    %cst_52 = arith.constant dense<0.000000e+00> : vector<8x128xf32>
    %97 = tpu.matmul %96, %4, %cst_52 {dimension_numbers = #tpu.dot_dimension_numbers<[1], [0], [0], [1], [0, 0, 1, 1], [], []>} : vector<8x64xf32>, vector<64x128xf32>, vector<8x128xf32> -> vector<8x128xf32>
    %98 = arith.addf %97, %7 : vector<8x128xf32>
    %99 = vector.extract_strided_slice %98 {offsets = [0, 0], sizes = [8, 64], strides = [1, 1]} : vector<8x128xf32> to vector<8x64xf32>
    %100 = arith.negf %99 : vector<8x64xf32>
    %101 = math.exp %100 : vector<8x64xf32>
    %cst_53 = arith.constant 1.000000e+00 : f32
    %102 = vector.broadcast %cst_53 : f32 to vector<8x64xf32>
    %103 = arith.addf %102, %101 : vector<8x64xf32>
    %104 = arith.divf %102, %103 : vector<8x64xf32>
    %105 = vector.extract_strided_slice %104 {offsets = [0, 0], sizes = [8, 32], strides = [1, 1]} : vector<8x64xf32> to vector<8x32xf32>
    %106 = vector.extract_strided_slice %104 {offsets = [0, 32], sizes = [8, 32], strides = [1, 1]} : vector<8x64xf32> to vector<8x32xf32>
    %107 = vector.extract_strided_slice %98 {offsets = [0, 64], sizes = [8, 32], strides = [1, 1]} : vector<8x128xf32> to vector<8x32xf32>
    %108 = vector.extract_strided_slice %98 {offsets = [0, 96], sizes = [8, 32], strides = [1, 1]} : vector<8x128xf32> to vector<8x32xf32>
    %109 = arith.mulf %105, %108 : vector<8x32xf32>
    %110 = arith.addf %107, %109 : vector<8x32xf32>
    %111 = math.tanh %110 : vector<8x32xf32>
    %cst_54 = arith.constant 1.000000e+00 : f32
    %112 = vector.broadcast %cst_54 : f32 to vector<8x32xf32>
    %113 = arith.subf %112, %106 : vector<8x32xf32>
    %114 = arith.mulf %113, %111 : vector<8x32xf32>
    %115 = arith.mulf %106, %80 : vector<8x32xf32>
    %116 = arith.addf %114, %115 : vector<8x32xf32>
    %c0_55 = arith.constant 0 : index
    %c32_56 = arith.constant 32 : index
    %117 = vector.load %arg11[%c0_55, %c32_56] : memref<8x64xf32, #tpu.memory_space<vmem>>, vector<8x32xf32>
    tpu.vector_store %arg11[%c0_55, %c32_56], %116 {strides = array<i32>} : memref<8x64xf32, #tpu.memory_space<vmem>>, vector<8x32xf32>,
    %cst_57 = arith.constant dense<0.000000e+00> : vector<8x32xf32>
    %118 = tpu.matmul %116, %8, %cst_57 {dimension_numbers = #tpu.dot_dimension_numbers<[1], [0], [0], [1], [0, 0, 1, 1], [], []>} : vector<8x32xf32>, vector<32x32xf32>, vector<8x32xf32> -> vector<8x32xf32>
    %119 = arith.addf %118, %11 : vector<8x32xf32>
    %120 = math.tanh %119 : vector<8x32xf32>
    %cst_58 = arith.constant dense<0.000000e+00> : vector<8x16xf32>
    %121 = tpu.matmul %120, %12, %cst_58 {dimension_numbers = #tpu.dot_dimension_numbers<[1], [0], [0], [1], [0, 0, 1, 1], [], []>} : vector<8x32xf32>, vector<32x16xf32>, vector<8x16xf32> -> vector<8x16xf32>
    %122 = arith.addf %121, %15 : vector<8x16xf32>
    %c2 = arith.constant 2 : index
    %123 = memref.load %arg0[%c2] : memref<8xf32, #tpu.memory_space<smem>>
    %124 = vector.broadcast %123 : f32 to vector<8x16xf32>
    %125 = arith.mulf %124, %122 : vector<8x16xf32>
    %126 = arith.addf %90, %125 : vector<8x16xf32>
    %c0_59 = arith.constant 0 : index
    %c32_60 = arith.constant 32 : index
    %127 = vector.load %arg10[%c0_59, %c32_60] : memref<8x128xf32, #tpu.memory_space<vmem>>, vector<8x16xf32>
    tpu.vector_store %arg10[%c0_59, %c32_60], %126 {strides = array<i32>} : memref<8x128xf32, #tpu.memory_space<vmem>>, vector<8x16xf32>,
    %cst_61 = arith.constant dense<0.000000e+00> : vector<8x32xf32>
    %128 = tpu.matmul %126, %0, %cst_61 {dimension_numbers = #tpu.dot_dimension_numbers<[1], [0], [0], [1], [0, 0, 1, 1], [], []>} : vector<8x16xf32>, vector<16x32xf32>, vector<8x32xf32> -> vector<8x32xf32>
    %129 = arith.addf %128, %3 : vector<8x32xf32>
    %130 = math.tanh %129 : vector<8x32xf32>
    %c0_62 = arith.constant 0 : index
    %c0_63 = arith.constant 0 : index
    %131 = vector.load %arg11[%c0_62, %c0_63] : memref<8x64xf32, #tpu.memory_space<vmem>>, vector<8x32xf32>
    tpu.vector_store %arg11[%c0_62, %c0_63], %130 {strides = array<i32>} : memref<8x64xf32, #tpu.memory_space<vmem>>, vector<8x32xf32>,
    %c0_64 = arith.constant 0 : index
    %c0_65 = arith.constant 0 : index
    %132 = vector.load %arg11[%c0_64, %c0_65] : memref<8x64xf32, #tpu.memory_space<vmem>>, vector<8x64xf32>
    %cst_66 = arith.constant dense<0.000000e+00> : vector<8x128xf32>
    %133 = tpu.matmul %132, %4, %cst_66 {dimension_numbers = #tpu.dot_dimension_numbers<[1], [0], [0], [1], [0, 0, 1, 1], [], []>} : vector<8x64xf32>, vector<64x128xf32>, vector<8x128xf32> -> vector<8x128xf32>
    %134 = arith.addf %133, %7 : vector<8x128xf32>
    %135 = vector.extract_strided_slice %134 {offsets = [0, 0], sizes = [8, 64], strides = [1, 1]} : vector<8x128xf32> to vector<8x64xf32>
    %136 = arith.negf %135 : vector<8x64xf32>
    %137 = math.exp %136 : vector<8x64xf32>
    %cst_67 = arith.constant 1.000000e+00 : f32
    %138 = vector.broadcast %cst_67 : f32 to vector<8x64xf32>
    %139 = arith.addf %138, %137 : vector<8x64xf32>
    %140 = arith.divf %138, %139 : vector<8x64xf32>
    %141 = vector.extract_strided_slice %140 {offsets = [0, 0], sizes = [8, 32], strides = [1, 1]} : vector<8x64xf32> to vector<8x32xf32>
    %142 = vector.extract_strided_slice %140 {offsets = [0, 32], sizes = [8, 32], strides = [1, 1]} : vector<8x64xf32> to vector<8x32xf32>
    %143 = vector.extract_strided_slice %134 {offsets = [0, 64], sizes = [8, 32], strides = [1, 1]} : vector<8x128xf32> to vector<8x32xf32>
    %144 = vector.extract_strided_slice %134 {offsets = [0, 96], sizes = [8, 32], strides = [1, 1]} : vector<8x128xf32> to vector<8x32xf32>
    %145 = arith.mulf %141, %144 : vector<8x32xf32>
    %146 = arith.addf %143, %145 : vector<8x32xf32>
    %147 = math.tanh %146 : vector<8x32xf32>
    %cst_68 = arith.constant 1.000000e+00 : f32
    %148 = vector.broadcast %cst_68 : f32 to vector<8x32xf32>
    %149 = arith.subf %148, %142 : vector<8x32xf32>
    %150 = arith.mulf %149, %147 : vector<8x32xf32>
    %151 = arith.mulf %142, %116 : vector<8x32xf32>
    %152 = arith.addf %150, %151 : vector<8x32xf32>
    %c0_69 = arith.constant 0 : index
    %c32_70 = arith.constant 32 : index
    %153 = vector.load %arg11[%c0_69, %c32_70] : memref<8x64xf32, #tpu.memory_space<vmem>>, vector<8x32xf32>
    tpu.vector_store %arg11[%c0_69, %c32_70], %152 {strides = array<i32>} : memref<8x64xf32, #tpu.memory_space<vmem>>, vector<8x32xf32>,
    %cst_71 = arith.constant dense<0.000000e+00> : vector<8x32xf32>
    %154 = tpu.matmul %152, %8, %cst_71 {dimension_numbers = #tpu.dot_dimension_numbers<[1], [0], [0], [1], [0, 0, 1, 1], [], []>} : vector<8x32xf32>, vector<32x32xf32>, vector<8x32xf32> -> vector<8x32xf32>
    %155 = arith.addf %154, %11 : vector<8x32xf32>
    %156 = math.tanh %155 : vector<8x32xf32>
    %cst_72 = arith.constant dense<0.000000e+00> : vector<8x16xf32>
    %157 = tpu.matmul %156, %12, %cst_72 {dimension_numbers = #tpu.dot_dimension_numbers<[1], [0], [0], [1], [0, 0, 1, 1], [], []>} : vector<8x32xf32>, vector<32x16xf32>, vector<8x16xf32> -> vector<8x16xf32>
    %158 = arith.addf %157, %15 : vector<8x16xf32>
    %c3 = arith.constant 3 : index
    %159 = memref.load %arg0[%c3] : memref<8xf32, #tpu.memory_space<smem>>
    %160 = vector.broadcast %159 : f32 to vector<8x16xf32>
    %161 = arith.mulf %160, %158 : vector<8x16xf32>
    %162 = arith.addf %126, %161 : vector<8x16xf32>
    %c0_73 = arith.constant 0 : index
    %c48 = arith.constant 48 : index
    %163 = vector.load %arg10[%c0_73, %c48] : memref<8x128xf32, #tpu.memory_space<vmem>>, vector<8x16xf32>
    tpu.vector_store %arg10[%c0_73, %c48], %162 {strides = array<i32>} : memref<8x128xf32, #tpu.memory_space<vmem>>, vector<8x16xf32>,
    %cst_74 = arith.constant dense<0.000000e+00> : vector<8x32xf32>
    %164 = tpu.matmul %162, %0, %cst_74 {dimension_numbers = #tpu.dot_dimension_numbers<[1], [0], [0], [1], [0, 0, 1, 1], [], []>} : vector<8x16xf32>, vector<16x32xf32>, vector<8x32xf32> -> vector<8x32xf32>
    %165 = arith.addf %164, %3 : vector<8x32xf32>
    %166 = math.tanh %165 : vector<8x32xf32>
    %c0_75 = arith.constant 0 : index
    %c0_76 = arith.constant 0 : index
    %167 = vector.load %arg11[%c0_75, %c0_76] : memref<8x64xf32, #tpu.memory_space<vmem>>, vector<8x32xf32>
    tpu.vector_store %arg11[%c0_75, %c0_76], %166 {strides = array<i32>} : memref<8x64xf32, #tpu.memory_space<vmem>>, vector<8x32xf32>,
    %c0_77 = arith.constant 0 : index
    %c0_78 = arith.constant 0 : index
    %168 = vector.load %arg11[%c0_77, %c0_78] : memref<8x64xf32, #tpu.memory_space<vmem>>, vector<8x64xf32>
    %cst_79 = arith.constant dense<0.000000e+00> : vector<8x128xf32>
    %169 = tpu.matmul %168, %4, %cst_79 {dimension_numbers = #tpu.dot_dimension_numbers<[1], [0], [0], [1], [0, 0, 1, 1], [], []>} : vector<8x64xf32>, vector<64x128xf32>, vector<8x128xf32> -> vector<8x128xf32>
    %170 = arith.addf %169, %7 : vector<8x128xf32>
    %171 = vector.extract_strided_slice %170 {offsets = [0, 0], sizes = [8, 64], strides = [1, 1]} : vector<8x128xf32> to vector<8x64xf32>
    %172 = arith.negf %171 : vector<8x64xf32>
    %173 = math.exp %172 : vector<8x64xf32>
    %cst_80 = arith.constant 1.000000e+00 : f32
    %174 = vector.broadcast %cst_80 : f32 to vector<8x64xf32>
    %175 = arith.addf %174, %173 : vector<8x64xf32>
    %176 = arith.divf %174, %175 : vector<8x64xf32>
    %177 = vector.extract_strided_slice %176 {offsets = [0, 0], sizes = [8, 32], strides = [1, 1]} : vector<8x64xf32> to vector<8x32xf32>
    %178 = vector.extract_strided_slice %176 {offsets = [0, 32], sizes = [8, 32], strides = [1, 1]} : vector<8x64xf32> to vector<8x32xf32>
    %179 = vector.extract_strided_slice %170 {offsets = [0, 64], sizes = [8, 32], strides = [1, 1]} : vector<8x128xf32> to vector<8x32xf32>
    %180 = vector.extract_strided_slice %170 {offsets = [0, 96], sizes = [8, 32], strides = [1, 1]} : vector<8x128xf32> to vector<8x32xf32>
    %181 = arith.mulf %177, %180 : vector<8x32xf32>
    %182 = arith.addf %179, %181 : vector<8x32xf32>
    %183 = math.tanh %182 : vector<8x32xf32>
    %cst_81 = arith.constant 1.000000e+00 : f32
    %184 = vector.broadcast %cst_81 : f32 to vector<8x32xf32>
    %185 = arith.subf %184, %178 : vector<8x32xf32>
    %186 = arith.mulf %185, %183 : vector<8x32xf32>
    %187 = arith.mulf %178, %152 : vector<8x32xf32>
    %188 = arith.addf %186, %187 : vector<8x32xf32>
    %c0_82 = arith.constant 0 : index
    %c32_83 = arith.constant 32 : index
    %189 = vector.load %arg11[%c0_82, %c32_83] : memref<8x64xf32, #tpu.memory_space<vmem>>, vector<8x32xf32>
    tpu.vector_store %arg11[%c0_82, %c32_83], %188 {strides = array<i32>} : memref<8x64xf32, #tpu.memory_space<vmem>>, vector<8x32xf32>,
    %cst_84 = arith.constant dense<0.000000e+00> : vector<8x32xf32>
    %190 = tpu.matmul %188, %8, %cst_84 {dimension_numbers = #tpu.dot_dimension_numbers<[1], [0], [0], [1], [0, 0, 1, 1], [], []>} : vector<8x32xf32>, vector<32x32xf32>, vector<8x32xf32> -> vector<8x32xf32>
    %191 = arith.addf %190, %11 : vector<8x32xf32>
    %192 = math.tanh %191 : vector<8x32xf32>
    %cst_85 = arith.constant dense<0.000000e+00> : vector<8x16xf32>
    %193 = tpu.matmul %192, %12, %cst_85 {dimension_numbers = #tpu.dot_dimension_numbers<[1], [0], [0], [1], [0, 0, 1, 1], [], []>} : vector<8x32xf32>, vector<32x16xf32>, vector<8x16xf32> -> vector<8x16xf32>
    %194 = arith.addf %193, %15 : vector<8x16xf32>
    %c4 = arith.constant 4 : index
    %195 = memref.load %arg0[%c4] : memref<8xf32, #tpu.memory_space<smem>>
    %196 = vector.broadcast %195 : f32 to vector<8x16xf32>
    %197 = arith.mulf %196, %194 : vector<8x16xf32>
    %198 = arith.addf %162, %197 : vector<8x16xf32>
    %c0_86 = arith.constant 0 : index
    %c64 = arith.constant 64 : index
    %199 = vector.load %arg10[%c0_86, %c64] : memref<8x128xf32, #tpu.memory_space<vmem>>, vector<8x16xf32>
    tpu.vector_store %arg10[%c0_86, %c64], %198 {strides = array<i32>} : memref<8x128xf32, #tpu.memory_space<vmem>>, vector<8x16xf32>,
    %cst_87 = arith.constant dense<0.000000e+00> : vector<8x32xf32>
    %200 = tpu.matmul %198, %0, %cst_87 {dimension_numbers = #tpu.dot_dimension_numbers<[1], [0], [0], [1], [0, 0, 1, 1], [], []>} : vector<8x16xf32>, vector<16x32xf32>, vector<8x32xf32> -> vector<8x32xf32>
    %201 = arith.addf %200, %3 : vector<8x32xf32>
    %202 = math.tanh %201 : vector<8x32xf32>
    %c0_88 = arith.constant 0 : index
    %c0_89 = arith.constant 0 : index
    %203 = vector.load %arg11[%c0_88, %c0_89] : memref<8x64xf32, #tpu.memory_space<vmem>>, vector<8x32xf32>
    tpu.vector_store %arg11[%c0_88, %c0_89], %202 {strides = array<i32>} : memref<8x64xf32, #tpu.memory_space<vmem>>, vector<8x32xf32>,
    %c0_90 = arith.constant 0 : index
    %c0_91 = arith.constant 0 : index
    %204 = vector.load %arg11[%c0_90, %c0_91] : memref<8x64xf32, #tpu.memory_space<vmem>>, vector<8x64xf32>
    %cst_92 = arith.constant dense<0.000000e+00> : vector<8x128xf32>
    %205 = tpu.matmul %204, %4, %cst_92 {dimension_numbers = #tpu.dot_dimension_numbers<[1], [0], [0], [1], [0, 0, 1, 1], [], []>} : vector<8x64xf32>, vector<64x128xf32>, vector<8x128xf32> -> vector<8x128xf32>
    %206 = arith.addf %205, %7 : vector<8x128xf32>
    %207 = vector.extract_strided_slice %206 {offsets = [0, 0], sizes = [8, 64], strides = [1, 1]} : vector<8x128xf32> to vector<8x64xf32>
    %208 = arith.negf %207 : vector<8x64xf32>
    %209 = math.exp %208 : vector<8x64xf32>
    %cst_93 = arith.constant 1.000000e+00 : f32
    %210 = vector.broadcast %cst_93 : f32 to vector<8x64xf32>
    %211 = arith.addf %210, %209 : vector<8x64xf32>
    %212 = arith.divf %210, %211 : vector<8x64xf32>
    %213 = vector.extract_strided_slice %212 {offsets = [0, 0], sizes = [8, 32], strides = [1, 1]} : vector<8x64xf32> to vector<8x32xf32>
    %214 = vector.extract_strided_slice %212 {offsets = [0, 32], sizes = [8, 32], strides = [1, 1]} : vector<8x64xf32> to vector<8x32xf32>
    %215 = vector.extract_strided_slice %206 {offsets = [0, 64], sizes = [8, 32], strides = [1, 1]} : vector<8x128xf32> to vector<8x32xf32>
    %216 = vector.extract_strided_slice %206 {offsets = [0, 96], sizes = [8, 32], strides = [1, 1]} : vector<8x128xf32> to vector<8x32xf32>
    %217 = arith.mulf %213, %216 : vector<8x32xf32>
    %218 = arith.addf %215, %217 : vector<8x32xf32>
    %219 = math.tanh %218 : vector<8x32xf32>
    %cst_94 = arith.constant 1.000000e+00 : f32
    %220 = vector.broadcast %cst_94 : f32 to vector<8x32xf32>
    %221 = arith.subf %220, %214 : vector<8x32xf32>
    %222 = arith.mulf %221, %219 : vector<8x32xf32>
    %223 = arith.mulf %214, %188 : vector<8x32xf32>
    %224 = arith.addf %222, %223 : vector<8x32xf32>
    %c0_95 = arith.constant 0 : index
    %c32_96 = arith.constant 32 : index
    %225 = vector.load %arg11[%c0_95, %c32_96] : memref<8x64xf32, #tpu.memory_space<vmem>>, vector<8x32xf32>
    tpu.vector_store %arg11[%c0_95, %c32_96], %224 {strides = array<i32>} : memref<8x64xf32, #tpu.memory_space<vmem>>, vector<8x32xf32>,
    %cst_97 = arith.constant dense<0.000000e+00> : vector<8x32xf32>
    %226 = tpu.matmul %224, %8, %cst_97 {dimension_numbers = #tpu.dot_dimension_numbers<[1], [0], [0], [1], [0, 0, 1, 1], [], []>} : vector<8x32xf32>, vector<32x32xf32>, vector<8x32xf32> -> vector<8x32xf32>
    %227 = arith.addf %226, %11 : vector<8x32xf32>
    %228 = math.tanh %227 : vector<8x32xf32>
    %cst_98 = arith.constant dense<0.000000e+00> : vector<8x16xf32>
    %229 = tpu.matmul %228, %12, %cst_98 {dimension_numbers = #tpu.dot_dimension_numbers<[1], [0], [0], [1], [0, 0, 1, 1], [], []>} : vector<8x32xf32>, vector<32x16xf32>, vector<8x16xf32> -> vector<8x16xf32>
    %230 = arith.addf %229, %15 : vector<8x16xf32>
    %c5 = arith.constant 5 : index
    %231 = memref.load %arg0[%c5] : memref<8xf32, #tpu.memory_space<smem>>
    %232 = vector.broadcast %231 : f32 to vector<8x16xf32>
    %233 = arith.mulf %232, %230 : vector<8x16xf32>
    %234 = arith.addf %198, %233 : vector<8x16xf32>
    %c0_99 = arith.constant 0 : index
    %c80 = arith.constant 80 : index
    %235 = vector.load %arg10[%c0_99, %c80] : memref<8x128xf32, #tpu.memory_space<vmem>>, vector<8x16xf32>
    tpu.vector_store %arg10[%c0_99, %c80], %234 {strides = array<i32>} : memref<8x128xf32, #tpu.memory_space<vmem>>, vector<8x16xf32>,
    %cst_100 = arith.constant dense<0.000000e+00> : vector<8x32xf32>
    %236 = tpu.matmul %234, %0, %cst_100 {dimension_numbers = #tpu.dot_dimension_numbers<[1], [0], [0], [1], [0, 0, 1, 1], [], []>} : vector<8x16xf32>, vector<16x32xf32>, vector<8x32xf32> -> vector<8x32xf32>
    %237 = arith.addf %236, %3 : vector<8x32xf32>
    %238 = math.tanh %237 : vector<8x32xf32>
    %c0_101 = arith.constant 0 : index
    %c0_102 = arith.constant 0 : index
    %239 = vector.load %arg11[%c0_101, %c0_102] : memref<8x64xf32, #tpu.memory_space<vmem>>, vector<8x32xf32>
    tpu.vector_store %arg11[%c0_101, %c0_102], %238 {strides = array<i32>} : memref<8x64xf32, #tpu.memory_space<vmem>>, vector<8x32xf32>,
    %c0_103 = arith.constant 0 : index
    %c0_104 = arith.constant 0 : index
    %240 = vector.load %arg11[%c0_103, %c0_104] : memref<8x64xf32, #tpu.memory_space<vmem>>, vector<8x64xf32>
    %cst_105 = arith.constant dense<0.000000e+00> : vector<8x128xf32>
    %241 = tpu.matmul %240, %4, %cst_105 {dimension_numbers = #tpu.dot_dimension_numbers<[1], [0], [0], [1], [0, 0, 1, 1], [], []>} : vector<8x64xf32>, vector<64x128xf32>, vector<8x128xf32> -> vector<8x128xf32>
    %242 = arith.addf %241, %7 : vector<8x128xf32>
    %243 = vector.extract_strided_slice %242 {offsets = [0, 0], sizes = [8, 64], strides = [1, 1]} : vector<8x128xf32> to vector<8x64xf32>
    %244 = arith.negf %243 : vector<8x64xf32>
    %245 = math.exp %244 : vector<8x64xf32>
    %cst_106 = arith.constant 1.000000e+00 : f32
    %246 = vector.broadcast %cst_106 : f32 to vector<8x64xf32>
    %247 = arith.addf %246, %245 : vector<8x64xf32>
    %248 = arith.divf %246, %247 : vector<8x64xf32>
    %249 = vector.extract_strided_slice %248 {offsets = [0, 0], sizes = [8, 32], strides = [1, 1]} : vector<8x64xf32> to vector<8x32xf32>
    %250 = vector.extract_strided_slice %248 {offsets = [0, 32], sizes = [8, 32], strides = [1, 1]} : vector<8x64xf32> to vector<8x32xf32>
    %251 = vector.extract_strided_slice %242 {offsets = [0, 64], sizes = [8, 32], strides = [1, 1]} : vector<8x128xf32> to vector<8x32xf32>
    %252 = vector.extract_strided_slice %242 {offsets = [0, 96], sizes = [8, 32], strides = [1, 1]} : vector<8x128xf32> to vector<8x32xf32>
    %253 = arith.mulf %249, %252 : vector<8x32xf32>
    %254 = arith.addf %251, %253 : vector<8x32xf32>
    %255 = math.tanh %254 : vector<8x32xf32>
    %cst_107 = arith.constant 1.000000e+00 : f32
    %256 = vector.broadcast %cst_107 : f32 to vector<8x32xf32>
    %257 = arith.subf %256, %250 : vector<8x32xf32>
    %258 = arith.mulf %257, %255 : vector<8x32xf32>
    %259 = arith.mulf %250, %224 : vector<8x32xf32>
    %260 = arith.addf %258, %259 : vector<8x32xf32>
    %c0_108 = arith.constant 0 : index
    %c32_109 = arith.constant 32 : index
    %261 = vector.load %arg11[%c0_108, %c32_109] : memref<8x64xf32, #tpu.memory_space<vmem>>, vector<8x32xf32>
    tpu.vector_store %arg11[%c0_108, %c32_109], %260 {strides = array<i32>} : memref<8x64xf32, #tpu.memory_space<vmem>>, vector<8x32xf32>,
    %cst_110 = arith.constant dense<0.000000e+00> : vector<8x32xf32>
    %262 = tpu.matmul %260, %8, %cst_110 {dimension_numbers = #tpu.dot_dimension_numbers<[1], [0], [0], [1], [0, 0, 1, 1], [], []>} : vector<8x32xf32>, vector<32x32xf32>, vector<8x32xf32> -> vector<8x32xf32>
    %263 = arith.addf %262, %11 : vector<8x32xf32>
    %264 = math.tanh %263 : vector<8x32xf32>
    %cst_111 = arith.constant dense<0.000000e+00> : vector<8x16xf32>
    %265 = tpu.matmul %264, %12, %cst_111 {dimension_numbers = #tpu.dot_dimension_numbers<[1], [0], [0], [1], [0, 0, 1, 1], [], []>} : vector<8x32xf32>, vector<32x16xf32>, vector<8x16xf32> -> vector<8x16xf32>
    %266 = arith.addf %265, %15 : vector<8x16xf32>
    %c6 = arith.constant 6 : index
    %267 = memref.load %arg0[%c6] : memref<8xf32, #tpu.memory_space<smem>>
    %268 = vector.broadcast %267 : f32 to vector<8x16xf32>
    %269 = arith.mulf %268, %266 : vector<8x16xf32>
    %270 = arith.addf %234, %269 : vector<8x16xf32>
    %c0_112 = arith.constant 0 : index
    %c96 = arith.constant 96 : index
    %271 = vector.load %arg10[%c0_112, %c96] : memref<8x128xf32, #tpu.memory_space<vmem>>, vector<8x16xf32>
    tpu.vector_store %arg10[%c0_112, %c96], %270 {strides = array<i32>} : memref<8x128xf32, #tpu.memory_space<vmem>>, vector<8x16xf32>,
    %cst_113 = arith.constant dense<0.000000e+00> : vector<8x32xf32>
    %272 = tpu.matmul %270, %0, %cst_113 {dimension_numbers = #tpu.dot_dimension_numbers<[1], [0], [0], [1], [0, 0, 1, 1], [], []>} : vector<8x16xf32>, vector<16x32xf32>, vector<8x32xf32> -> vector<8x32xf32>
    %273 = arith.addf %272, %3 : vector<8x32xf32>
    %274 = math.tanh %273 : vector<8x32xf32>
    %c0_114 = arith.constant 0 : index
    %c0_115 = arith.constant 0 : index
    %275 = vector.load %arg11[%c0_114, %c0_115] : memref<8x64xf32, #tpu.memory_space<vmem>>, vector<8x32xf32>
    tpu.vector_store %arg11[%c0_114, %c0_115], %274 {strides = array<i32>} : memref<8x64xf32, #tpu.memory_space<vmem>>, vector<8x32xf32>,
    %c0_116 = arith.constant 0 : index
    %c0_117 = arith.constant 0 : index
    %276 = vector.load %arg11[%c0_116, %c0_117] : memref<8x64xf32, #tpu.memory_space<vmem>>, vector<8x64xf32>
    %cst_118 = arith.constant dense<0.000000e+00> : vector<8x128xf32>
    %277 = tpu.matmul %276, %4, %cst_118 {dimension_numbers = #tpu.dot_dimension_numbers<[1], [0], [0], [1], [0, 0, 1, 1], [], []>} : vector<8x64xf32>, vector<64x128xf32>, vector<8x128xf32> -> vector<8x128xf32>
    %278 = arith.addf %277, %7 : vector<8x128xf32>
    %279 = vector.extract_strided_slice %278 {offsets = [0, 0], sizes = [8, 64], strides = [1, 1]} : vector<8x128xf32> to vector<8x64xf32>
    %280 = arith.negf %279 : vector<8x64xf32>
    %281 = math.exp %280 : vector<8x64xf32>
    %cst_119 = arith.constant 1.000000e+00 : f32
    %282 = vector.broadcast %cst_119 : f32 to vector<8x64xf32>
    %283 = arith.addf %282, %281 : vector<8x64xf32>
    %284 = arith.divf %282, %283 : vector<8x64xf32>
    %285 = vector.extract_strided_slice %284 {offsets = [0, 0], sizes = [8, 32], strides = [1, 1]} : vector<8x64xf32> to vector<8x32xf32>
    %286 = vector.extract_strided_slice %284 {offsets = [0, 32], sizes = [8, 32], strides = [1, 1]} : vector<8x64xf32> to vector<8x32xf32>
    %287 = vector.extract_strided_slice %278 {offsets = [0, 64], sizes = [8, 32], strides = [1, 1]} : vector<8x128xf32> to vector<8x32xf32>
    %288 = vector.extract_strided_slice %278 {offsets = [0, 96], sizes = [8, 32], strides = [1, 1]} : vector<8x128xf32> to vector<8x32xf32>
    %289 = arith.mulf %285, %288 : vector<8x32xf32>
    %290 = arith.addf %287, %289 : vector<8x32xf32>
    %291 = math.tanh %290 : vector<8x32xf32>
    %cst_120 = arith.constant 1.000000e+00 : f32
    %292 = vector.broadcast %cst_120 : f32 to vector<8x32xf32>
    %293 = arith.subf %292, %286 : vector<8x32xf32>
    %294 = arith.mulf %293, %291 : vector<8x32xf32>
    %295 = arith.mulf %286, %260 : vector<8x32xf32>
    %296 = arith.addf %294, %295 : vector<8x32xf32>
    %c0_121 = arith.constant 0 : index
    %c32_122 = arith.constant 32 : index
    %297 = vector.load %arg11[%c0_121, %c32_122] : memref<8x64xf32, #tpu.memory_space<vmem>>, vector<8x32xf32>
    tpu.vector_store %arg11[%c0_121, %c32_122], %296 {strides = array<i32>} : memref<8x64xf32, #tpu.memory_space<vmem>>, vector<8x32xf32>,
    %cst_123 = arith.constant dense<0.000000e+00> : vector<8x32xf32>
    %298 = tpu.matmul %296, %8, %cst_123 {dimension_numbers = #tpu.dot_dimension_numbers<[1], [0], [0], [1], [0, 0, 1, 1], [], []>} : vector<8x32xf32>, vector<32x32xf32>, vector<8x32xf32> -> vector<8x32xf32>
    %299 = arith.addf %298, %11 : vector<8x32xf32>
    %300 = math.tanh %299 : vector<8x32xf32>
    %cst_124 = arith.constant dense<0.000000e+00> : vector<8x16xf32>
    %301 = tpu.matmul %300, %12, %cst_124 {dimension_numbers = #tpu.dot_dimension_numbers<[1], [0], [0], [1], [0, 0, 1, 1], [], []>} : vector<8x32xf32>, vector<32x16xf32>, vector<8x16xf32> -> vector<8x16xf32>
    %302 = arith.addf %301, %15 : vector<8x16xf32>
    %c7 = arith.constant 7 : index
    %303 = memref.load %arg0[%c7] : memref<8xf32, #tpu.memory_space<smem>>
    %304 = vector.broadcast %303 : f32 to vector<8x16xf32>
    %305 = arith.mulf %304, %302 : vector<8x16xf32>
    %306 = arith.addf %270, %305 : vector<8x16xf32>
    %c0_125 = arith.constant 0 : index
    %c112 = arith.constant 112 : index
    %307 = vector.load %arg10[%c0_125, %c112] : memref<8x128xf32, #tpu.memory_space<vmem>>, vector<8x16xf32>
    tpu.vector_store %arg10[%c0_125, %c112], %306 {strides = array<i32>} : memref<8x128xf32, #tpu.memory_space<vmem>>, vector<8x16xf32>,
    return
  }
}

</mosaic_0001>

<bundles_post_ra>
// kernel: recnode_integrate.1
= control target key start
LH: loop header
LB: loop body
LE: loop exit
PB: predicated region body
PF: predicated region fallthrough
CT: control target
= control target key end

     0   :  { %15 = vsyncpa [#allocation5], 0  ;;  %s4479_s0 = inlined_call_operand.vmem [shape: f32[8], index: 0, kind: input, shape index: {}]   ;;  %s4480_s1 = inlined_call_operand.hbm [shape: f32[8,16], index: 1, kind: input, shape index: {}]   ;;  %s4481_s2 = inlined_call_operand.hbm [shape: f32[16,32], index: 2, kind: input, shape index: {}]   ;;  %s4482_s3 = inlined_call_operand.vmem [shape: f32[1,32], index: 3, kind: input, shape index: {}]   ;;  %s4483_s4 = inlined_call_operand.hbm [shape: f32[64,128], index: 4, kind: input, shape index: {}]   ;;  %s4484_s5 = inlined_call_operand.vmem [shape: f32[1,128], index: 5, kind: input, shape index: {}]   ;;  %s4485_s6 = inlined_call_operand.vmem [shape: f32[32,32], index: 6, kind: input, shape index: {}]   ;;  %s4486_s7 = inlined_call_operand.vmem [shape: f32[1,32], index: 7, kind: input, shape index: {}]   ;;  %s4487_s8 = inlined_call_operand.hbm [shape: f32[32,16], index: 8, kind: input, shape index: {}]   ;;  %s4488_s9 = inlined_call_operand.vmem [shape: f32[1,16], index: 9, kind: input, shape index: {}]   ;;  %s4489_s10 = inlined_call_operand.vmem [shape: f32[8,128], index: 10, kind: output, shape index: {}]  }
   0x1   :  { %16 = vsyncpa [#allocation4], 0 }
   0x2   :  { %17 = vsyncpa [#allocation8], 0 }
   0x3   :  { %18 = vsyncpa [#allocation11], 0  ;;  %s3858_s13 = smov [#allocation7]   ;;  %s25_s17 = sshll.u32 %s4479_s0, 4  ;;  %s26_s17 = int_to_ptr.vmem [resolvable:$true] %s25_s17 }
   0x4   :  { %s44_s14 = sshll.u32 %s3858_s13, 4  ;;  %s3750_s20 = scalar_lea.hbm %s4481_s2, 256  ;;  %s45_s14 = int_to_ptr.vmem [resolvable:$true] %s44_s14 }
   0x5   :  { %p3751_p0 = scmp.ne.s32.totalorder %s4481_s2, %s3750_s20  ;;  %p3754_p1 = scmp.lt.u32.totalorder %s3750_s20, %s4481_s2 }
   0x7   :  { %p3756_p2 = pnand %p3754_p1, %p3751_p0 }
   0x9   :  { %3759 = shalt.err (!%p3756_p2)
}
   0xa   :  { %s3760_s25 = scalar_lea.vmem %s45_s14, 256  ;;  %p3765_p4 = scmp.lt.s32.totalorder %s45_s14, %s45_s14 }
   0xb   :  { %p3761_p3 = scmp.ne.s32.totalorder %s45_s14, %s3760_s25  ;;  %p3766_p5 = scmp.lt.s32.totalorder %s3760_s25, %s3760_s25 }
   0xd   :  { %p3767_p6 = por %p3766_p5, %p3765_p4 }
   0xf   :  { %p3768_p7 = pnand %p3767_p6, %p3761_p3 }
  0x11   :  { %3771 = shalt.err (!%p3768_p7)
}
  0x12   :  { %s3859_s0 = smov 128   ;;  %s3860_s26 = smov 8  }
  0x13   :  { %50 = dma.hbm_to_vmem [thread:$0]  %s4481_s2, 256, %s45_s14, [#allocation8], %s3859_s0, %s3859_s0, %s3860_s26  }
  0x14   :  { %s3772_s29 = scalar_lea.vmem %s26_s17, 16  ;;  %p3777_p9 = scmp.lt.s32.totalorder %s26_s17, %s26_s17 }
  0x15   :  { %p3773_p8 = scmp.ne.s32.totalorder %s26_s17, %s3772_s29  ;;  %p3778_p10 = scmp.lt.s32.totalorder %s3772_s29, %s3772_s29 }
  0x17   :  { %p3779_p11 = por %p3778_p10, %p3777_p9 }
  0x19   :  { %p3780_p12 = pnand %p3779_p11, %p3773_p8 }
  0x1b   :  { %3783 = shalt.err (!%p3780_p12)
}
  0x1c   :  { %s3861_s30 = smov [#allocation3]   ;;  %s3862_s11 = smov [#allocation6]  }
  0x1d   :  { %28 = dma.vmem_to_smem %s26_s17, 16, %s3861_s30, [#allocation5]  }
  0x1e   :  { %s35_s12 = sshll.u32 %s3862_s11, 4  ;;  %s3863_s13 = smov [#allocation9]   ;;  %s36_s12 = int_to_ptr.vmem [resolvable:$true] %s35_s12 }
  0x1f   :  { %s58_s15 = sshll.u32 %s3863_s13, 4  ;;  %s3784_s2 = scalar_lea.hbm %s4480_s1, 128  ;;  %s3948_s15 = int_to_ptr.vmem [resolvable:$true] %s58_s15 }
  0x20   :  { %p3785_p13 = scmp.ne.s32.totalorder %s4480_s1, %s3784_s2  ;;  %p3788_p0 = scmp.lt.u32.totalorder %s3784_s2, %s4480_s1 }
  0x22   :  { %p3790_p1 = pnand %p3788_p0, %p3785_p13 }
  0x24   :  { %3793 = shalt.err (!%p3790_p1)
}
  0x25   :  { %s3794_s17 = scalar_lea.vmem %s36_s12, 128  ;;  %p3799_p3 = scmp.lt.s32.totalorder %s36_s12, %s36_s12 }
  0x26   :  { %p3795_p2 = scmp.ne.s32.totalorder %s36_s12, %s3794_s17  ;;  %p3800_p4 = scmp.lt.s32.totalorder %s3794_s17, %s3794_s17 }
  0x28   :  { %p3801_p5 = por %p3800_p4, %p3799_p3 }
  0x2a   :  { %p3802_p6 = pnand %p3801_p5, %p3795_p2 }
  0x2c   :  { %3805 = shalt.err (!%p3802_p6)
}
  0x2d   :  { %38 = dma.hbm_to_vmem [thread:$0]  %s4480_s1, 128, %s36_s12, [#allocation4]  }
  0x2e   :  { %s3806_s27 = scalar_lea.hbm %s4483_s4, 1024 }
  0x2f   :  { %p3807_p7 = scmp.ne.s32.totalorder %s4483_s4, %s3806_s27  ;;  %p3810_p8 = scmp.lt.u32.totalorder %s3806_s27, %s4483_s4 }
  0x31   :  { %p3812_p9 = pnand %p3810_p8, %p3807_p7 }
  0x33   :  { %3815 = shalt.err (!%p3812_p9)
}
  0x34   :  { %s3816_s13 = scalar_lea.vmem %s3948_s15, 1024  ;;  %p3821_p11 = scmp.lt.s32.totalorder %s3948_s15, %s3948_s15 }
  0x35   :  { %p3817_p10 = scmp.ne.s32.totalorder %s3948_s15, %s3816_s13  ;;  %p3822_p12 = scmp.lt.s32.totalorder %s3816_s13, %s3816_s13 }
  0x37   :  { %p3823_p13 = por %p3822_p12, %p3821_p11 }
  0x39   :  { %p3824_p0 = pnand %p3823_p13, %p3817_p10 }
  0x3b   :  { %3827 = shalt.err (!%p3824_p0)
}
  0x3c   :  { %64 = dma.hbm_to_vmem [thread:$0]  %s4483_s4, 1024, %s3948_s15, [#allocation8], %s3859_s0, %s3859_s0, %s3860_s26  }
  0x3d   :  { %s3864_s16 = smov [#allocation10]   ;;  %s3828_s19 = scalar_lea.hbm %s4487_s8, 512 }
  0x3e   :  { %s76_s18 = sshll.u32 %s3864_s16, 4  ;;  %p3829_p1 = scmp.ne.s32.totalorder %s4487_s8, %s3828_s19  ;;  %s77_s18 = int_to_ptr.vmem [resolvable:$true] %s76_s18 }
  0x3f   :  { %p3832_p2 = scmp.lt.u32.totalorder %s3828_s19, %s4487_s8 }
  0x41   :  { %p3834_p3 = pnand %p3832_p2, %p3829_p1 }
  0x43   :  { %3837 = shalt.err (!%p3834_p3)
}
  0x44   :  { %s3838_s23 = scalar_lea.vmem %s77_s18, 512  ;;  %p3843_p5 = scmp.lt.s32.totalorder %s77_s18, %s77_s18 }
  0x45   :  { %p3839_p4 = scmp.ne.s32.totalorder %s77_s18, %s3838_s23  ;;  %p3844_p6 = scmp.lt.s32.totalorder %s3838_s23, %s3838_s23 }
  0x47   :  { %p3845_p7 = por %p3844_p6, %p3843_p5 }
  0x49   :  { %p3846_p8 = pnand %p3845_p7, %p3839_p4 }
  0x4b   :  { %3849 = shalt.err (!%p3846_p8)
}
  0x4c   :  { %82 = dma.hbm_to_vmem [thread:$0]  %s4487_s8, 512, %s77_s18, [#allocation11], %s3859_s0, %s3859_s0, %s3860_s26  }
  0x4d   :  { %3850 = dma.done.wait [#allocation5], 16  }
  0x4e   :  { %3851 = vsyncadd [#allocation5], 4294967280 }
  0x4f   :  { %3852 = dma.done.wait [#allocation4], 128  }
  0x50   :  { %3853 = vsyncadd [#allocation4], 4294967168 }
  0x51   :  { %3854 = dma.done.wait [#allocation8], 1280  }
  0x52   :  { %3855 = vsyncadd [#allocation8], 4294966016 }
  0x53   :  { %3856 = dma.done.wait [#allocation11], 512  }
  0x54   :  { %3857 = vsyncadd [#allocation11], 4294966784 }
  0x55   :  { %100 = sfence }
  0x56   :  { %v101_v0 = vld [vmem:[#allocation7] sm:$0xff]  ;;  %v102_v1 = vld [vmem:[#allocation7 + $0x8] sm:$0xff]  ;;  %v3865_v2 = vmov 0.0|0.0   ;;  %vm3866_vm0 = vmmov 0   ;;  %v3867_v4 = vmov 0.0   ;;  %v4006_v5 = vld [vmem:[#allocation6] sm:$0xff] }
  0x57   :  { %3433 = vmatprep.subr.bf16.mxu0 %v3865_v2  ;;  %v3998_v3 = vpack.c.bf16 %v102_v1, %v101_v0  ;;  %3053 = vmatprep.mubr.msk.f32.mxu0 %vm3866_vm0, %v3867_v4  ;;  %vm150_vm1 = vcmask 130048   ;;  %v110_v6 = vld [vmem:[#allocation9] sm:$0xff]  ;;  %v111_v7 = vld [vmem:[#allocation9 + $0x8] sm:$0xff]  ;;  %v112_v8 = vld [vmem:[#allocation9 + $0x10] sm:$0xff]  ;;  %vm148_vm2 = vcmask 523264   ;;  %vm225_vm3 = vcmask 261120  }
  0x58   :  { %3436 = vmatprep.subr.bf16.mxu1 %v3865_v2  ;;  %3072 = vmatprep.mubr.msk.f32.mxu1 %vm3866_vm0, %v3867_v4  ;;  %v4013_v9 = vpack.c.bf16 %v111_v7, %v110_v6  ;;  %v113_v10 = vld [vmem:[#allocation9 + $0x18] sm:$0xff]  ;;  %149 = vst.msk [vmem:[#allocation2] sm:$0xff] %vm148_vm2, %v3867_v4  ;;  %v114_v12 = vld [vmem:[#allocation9 + $0x20] sm:$0xff]  ;;  %v115_v13 = vld [vmem:[#allocation9 + $0x28] sm:$0xff]  ;;  %s3868_s25 = smov 32   ;;  %s3869_s27 = smov 64  }
  0x59   :  { %3435 = vmatpush3.bf16.msra.mxu0 %v3998_v3  ;;  %v4018_v11 = vpack.c.bf16 %v113_v10, %v112_v8  ;;  %v4022_v14 = vpack.c.bf16 %v115_v13, %v114_v12  ;;  %v116_v15 = vld [vmem:[#allocation9 + $0x30] sm:$0xff]  ;;  %v117_v16 = vld [vmem:[#allocation9 + $0x38] sm:$0xff]  ;;  %v4034_v18 = vld [vmem:[%s4482_s3] ss:$0 sm:$0xff]  ;;  %s3870_s18 = smov 96   ;;  %vm326_vm4 = vcmask 523520  }
  0x5a   :  { %3448 = vmatprep.subr.bf16.mxu0 %v3865_v2  ;;  %3438 = vmatpush3.bf16.msra.mxu1 %v4013_v9  ;;  %v4026_v17 = vpack.c.bf16 %v117_v16, %v116_v15  ;;  %v4046_v24 = vld [vmem:[%s4484_s5] ss:$0 sm:$0xff]  ;;  %v126_v37 = vld [vmem:[%s4485_s6 + $0x8] sm:$0xff]  ;;  %v127_v38 = vld [vmem:[%s4485_s6 + $0x10] sm:$0xff]  ;;  %s477_s14 = sld [smem:[#allocation3]]  ;;  %s2836_s22 = sld [smem:[#allocation3 + $0x1]] }
  0x5b   :  { %3439 = vmatprep.subr.bf16.mxu1 %v3865_v2  ;;  %v125_v36 = vld [vmem:[%s4485_s6] sm:$0xff]  ;;  %v128_v40 = vld [vmem:[%s4485_s6 + $0x18] sm:$0xff]  ;;  %v137_v50 = vld [vmem:[#allocation10 + $0x8] sm:$0xff]  ;;  %s2842_s23 = sld [smem:[#allocation3 + $0x2]]  ;;  %s2848_s4 = sld [smem:[#allocation3 + $0x3]]  ;;  %vm814_vm5 = vcmask 261248  }
  0x5c   :  { %3054 = vmatmul.mubr.msk.f32.vlgmr.msra.gmra.mrb[0].mxu0 %vm150_vm1, %v4006_v5  ;;  %v4060_v39 = vpack.c.bf16 %v126_v37, %v125_v36  ;;  %v4066_v41 = vpack.c.bf16 %v128_v40, %v127_v38  ;;  %v136_v49 = vld [vmem:[#allocation10] sm:$0xff]  ;;  %v138_v51 = vld [vmem:[#allocation10 + $0x10] sm:$0xff]  ;;  %v139_v53 = vld [vmem:[#allocation10 + $0x18] sm:$0xff]  ;;  %s2854_s15 = sld [smem:[#allocation3 + $0x4]]  ;;  %s2860_s8 = sld [smem:[#allocation3 + $0x5]]  ;;  %vm1147_vm6 = vcmask 392448  }
  0x5d   :  { %3083 = vmatprep.mubr.msk.f32.mxu0 %vm3866_vm0, %v3867_v4  ;;  %v4081_v52 = vpack.c.bf16 %v137_v50, %v136_v49  ;;  %v4084_v54 = vpack.c.bf16 %v139_v53, %v138_v51  ;;  %v4092_v55 = vld [vmem:[%s4486_s7] ss:$0 sm:$0xff]  ;;  %s2866_s0 = sld [smem:[#allocation3 + $0x6]]  ;;  %s3873_s30 = smov 80   ;;  %vm1480_vm7 = vcmask 523648   ;;  %vm1813_vm8 = vcmask 654848  }
  0x5e   :  { %3441 = vmatpush3.bf16.msra.mxu1 %v4018_v11  ;;  %3450 = vmatpush3.bf16.msra.mxu0 %v4060_v39  ;;  %v4109_v60 = vld [vmem:[%s4488_s9] ss:$0 sm:$0xff]  ;;  %vm2146_vm9 = vcmask 786048   ;;  %vm2479_vm10 = vcmask 917248   ;;  %s2872_s17 = sld [smem:[#allocation3 + $0x7]]  ;;  %vm2812_vm11 = vcmask 1048448  }
  0x5f   :  { %3442 = vmatprep.subr.bf16.mxu1 %v3865_v2  ;;  %3451 = vmatprep.subr.bf16.mxu0 %v3865_v2 }
  0x60   :  { %v478_v62 = vstv %s477_s14 }
  0x62   :  { %3444 = vmatpush3.bf16.msra.mxu1 %v4022_v14  ;;  %3453 = vmatpush3.bf16.msra.mxu0 %v4066_v41 }
  0x63   :  { %3445 = vmatprep.subr.bf16.mxu1 %v3865_v2  ;;  %3454 = vmatprep.subr.bf16.mxu0 %v3865_v2 }
  0x66   :  { %3447 = vmatpush3.bf16.msra.mxu1 %v4026_v17 }
  0x67   :  { %3460 = vmatprep.subr.bf16.mxu1 %v3865_v2 }
 0x12f   :  { %v220_v19 = vpop.f32.mrb[0].mxu0 }
 0x130   :  { %v221_v20 = vadd.f32 %v4034_v18, %v220_v19  ;;  %v3055_v21 = vpop.f32.mrb[1].mxu0 }
 0x132   :  { %3666 = vtanh.f32 %v221_v20 }
 0x13c   :  { %v3667_v22 = vpop.eup %3666 }
 0x13d   :  { %226 = vst.msk [vmem:[#allocation2] sm:$0xff] %vm225_vm3, %v3667_v22 }
 0x144   :  { %v227_v23 = vld [vmem:[#allocation2] sm:$0xff] }
 0x145   :  { %3073 = vmatmul.mubr.msk.f32.vlgmr.msra.gmra.mrb[0].mxu1 %vm148_vm2, %v227_v23 }
 0x146   :  { %3462 = vmatpush3.bf16.msra.mxu1 %v3998_v3  ;;  %3101 = vmatprep.mubr.msk.f32.mxu1 %vm3866_vm0, %v3867_v4 }
 0x147   :  { %3475 = vmatprep.subr.bf16.mxu1 %v3865_v2 }
 0x218   :  { %v297_v25 = vpop.f32.mrb[0].mxu1 }
 0x219   :  { %v298_v26 = vadd.f32 %v4046_v24, %v297_v25  ;;  %v3074_v27 = vpop.f32.mrb[1].mxu1 }
 0x21b   :  { %308 = vrot.lane.b32.xlu0 %v298_v26, %s3868_s25  ;;  %v2828_v28 = vmul.f32 -1.442695, %v298_v26 }
 0x21d   :  { %3668 = vpow2.f32 %v2828_v28 }
 0x227   :  { %v3669_v29 = vpop.eup %3668 }
 0x228   :  { %v304_v30 = vadd.f32 1.0, %v3669_v29 }
 0x22a   :  { %3670 = vrcp.f32 %v304_v30 }
 0x234   :  { %v3671_v31 = vpop.eup %3670 }
 0x235   :  { %v318_v43 = vsub.f32 1.0, %v3671_v31  ;;  %v324_v45 = vmul.f32 0.0, %v3671_v31 }
 0x28d   :  { %v309_v32 = vpop.permute.xlu0 %308 }
 0x28e   :  { %v311_v33 = vmul.f32 %v3671_v31, %v309_v32 }
 0x290   :  { %313 = vrot.lane.b32.xlu0 %v311_v33, %s3869_s27 }
 0x302   :  { %v314_v34 = vpop.permute.xlu0 %313 }
 0x303   :  { %v316_v35 = vadd.f32 %v314_v34, %v298_v26 }
 0x305   :  { %3672 = vtanh.f32 %v316_v35 }
 0x30f   :  { %v3673_v42 = vpop.eup %3672 }
 0x310   :  { %320 = vrot.lane.b32.xlu1 %v3673_v42, %s3870_s18  ;;  %v807_v42 = vstv %s2836_s22 }
 0x382   :  { %v321_v44 = vpop.permute.xlu1 %320 }
 0x383   :  { %v323_v46 = vmul.f32 %v321_v44, %v318_v43 }
 0x385   :  { %v4072_v47 = vadd.f32 %v324_v45, %v323_v46 }
 0x387   :  { %327 = vst.msk [vmem:[#allocation2] sm:$0xff] %vm326_vm4, %v4072_v47  ;;  %329 = vrot.lane.b32.xlu1 %v4072_v47, %s3870_s18 }
 0x3f9   :  { %v330_v48 = vpop.permute.xlu1 %329 }
 0x3fa   :  { %3084 = vmatmul.mubr.msk.f32.vlgmr.msra.gmra.mrb[2].mxu0 %vm225_vm3, %v330_v48 }
 0x3fb   :  { %3094 = vmatprep.mubr.msk.f32.mxu0 %vm3866_vm0, %v3867_v4  ;;  %3456 = vmatpush3.bf16.msra.mxu0 %v4081_v52 }
 0x3fc   :  { %3457 = vmatprep.subr.bf16.mxu0 %v3865_v2 }
 0x3ff   :  { %3459 = vmatpush3.bf16.msra.mxu0 %v4084_v54 }
 0x400   :  { %3463 = vmatprep.subr.bf16.mxu0 %v3865_v2 }
 0x4cd   :  { %v399_v56 = vpop.f32.mrb[2].mxu0 }
 0x4ce   :  { %v400_v57 = vadd.f32 %v4092_v55, %v399_v56  ;;  %v3085_v58 = vpop.f32.mrb[3].mxu0 }
 0x4d0   :  { %3674 = vtanh.f32 %v400_v57 }
 0x4da   :  { %v3675_v59 = vpop.eup %3674 }
 0x4db   :  { %3095 = vmatmul.mubr.msk.f32.vlgmr.msra.gmra.mrb[4].mxu0 %vm225_vm3, %v3675_v59 }
 0x4dc   :  { %3465 = vmatpush3.bf16.msra.mxu0 %v4013_v9  ;;  %3120 = vmatprep.mubr.msk.f32.mxu0 %vm3866_vm0, %v3867_v4 }
 0x4dd   :  { %3466 = vmatprep.subr.bf16.mxu0 %v3865_v2 }
 0x4e0   :  { %3468 = vmatpush3.bf16.msra.mxu0 %v4018_v11 }
 0x4e1   :  { %3469 = vmatprep.subr.bf16.mxu0 %v3865_v2 }
 0x4e4   :  { %3471 = vmatpush3.bf16.msra.mxu0 %v4022_v14 }
 0x4e5   :  { %3472 = vmatprep.subr.bf16.mxu0 %v3865_v2 }
 0x4e8   :  { %3474 = vmatpush3.bf16.msra.mxu0 %v4026_v17 }
 0x4e9   :  { %3487 = vmatprep.subr.bf16.mxu0 %v3865_v2 }
 0x5ae   :  { %v473_v61 = vpop.f32.mrb[4].mxu0 }
 0x5af   :  { %v474_v63 = vadd.f32 %v4109_v60, %v473_v61  ;;  %v3096_v0 = vpop.f32.mrb[5].mxu0 }
 0x5b1   :  { %v479_v1 = vmul.f32 %v478_v62, %v474_v63 }
 0x5b3   :  { %v4113_v6 = vadd.f32 %v479_v1, %v4006_v5 }
 0x5b5   :  { %481 = vst.msk [vmem:[%s4489_s10] sm:$0xff] %vm150_vm1, %v4113_v6  ;;  %3102 = vmatmul.mubr.msk.f32.vlgmr.msra.gmra.mrb[2].mxu1 %vm150_vm1, %v4113_v6 }
 0x5b6   :  { %3477 = vmatpush3.bf16.msra.mxu1 %v4060_v39  ;;  %3131 = vmatprep.mubr.msk.f32.mxu1 %vm3866_vm0, %v3867_v4 }
 0x5b7   :  { %3478 = vmatprep.subr.bf16.mxu1 %v3865_v2 }
 0x5ba   :  { %3480 = vmatpush3.bf16.msra.mxu1 %v4066_v41 }
 0x5bb   :  { %3481 = vmatprep.subr.bf16.mxu1 %v3865_v2 }
 0x688   :  { %v551_v5 = vpop.f32.mrb[2].mxu1 }
 0x689   :  { %v552_v7 = vadd.f32 %v4034_v18, %v551_v5  ;;  %v3103_v8 = vpop.f32.mrb[3].mxu1 }
 0x68b   :  { %3676 = vtanh.f32 %v552_v7 }
 0x695   :  { %v3677_v10 = vpop.eup %3676 }
 0x696   :  { %556 = vst.msk [vmem:[#allocation2] sm:$0xff] %vm225_vm3, %v3677_v10 }
 0x69d   :  { %v557_v12 = vld [vmem:[#allocation2] sm:$0xff] }
 0x69e   :  { %3121 = vmatmul.mubr.msk.f32.vlgmr.msra.gmra.mrb[6].mxu0 %vm148_vm2, %v557_v12 }
 0x69f   :  { %3489 = vmatpush3.bf16.msra.mxu0 %v3998_v3  ;;  %3149 = vmatprep.mubr.msk.f32.mxu0 %vm3866_vm0, %v3867_v4 }
 0x6a0   :  { %3502 = vmatprep.subr.bf16.mxu0 %v3865_v2 }
 0x771   :  { %v627_v13 = vpop.f32.mrb[6].mxu0 }
 0x772   :  { %v628_v15 = vadd.f32 %v4046_v24, %v627_v13  ;;  %v3122_v16 = vpop.f32.mrb[7].mxu0 }
 0x774   :  { %638 = vrot.lane.b32.xlu0 %v628_v15, %s3868_s25  ;;  %v2833_v19 = vmul.f32 -1.442695, %v628_v15 }
 0x776   :  { %3678 = vpow2.f32 %v2833_v19 }
 0x780   :  { %v3679_v20 = vpop.eup %3678 }
 0x781   :  { %v634_v21 = vadd.f32 1.0, %v3679_v20 }
 0x783   :  { %3680 = vrcp.f32 %v634_v21 }
 0x78d   :  { %v3681_v22 = vpop.eup %3680 }
 0x78e   :  { %v648_v29 = vsub.f32 1.0, %v3681_v22  ;;  %v654_v31 = vmul.f32 %v3681_v22, %v4072_v47 }
 0x7e6   :  { %v639_v23 = vpop.permute.xlu0 %638 }
 0x7e7   :  { %v641_v25 = vmul.f32 %v3681_v22, %v639_v23  ;;  %v1140_v23 = vstv %s2842_s23 }
 0x7e9   :  { %643 = vrot.lane.b32.xlu1 %v641_v25, %s3869_s27 }
 0x85b   :  { %v644_v26 = vpop.permute.xlu1 %643 }
 0x85c   :  { %v646_v27 = vadd.f32 %v644_v26, %v628_v15 }
 0x85e   :  { %3682 = vtanh.f32 %v646_v27 }
 0x868   :  { %v3683_v28 = vpop.eup %3682 }
 0x869   :  { %650 = vrot.lane.b32.xlu0 %v3683_v28, %s3870_s18 }
 0x8db   :  { %v651_v30 = vpop.permute.xlu0 %650 }
 0x8dc   :  { %v653_v32 = vmul.f32 %v651_v30, %v648_v29 }
 0x8de   :  { %v4140_v33 = vadd.f32 %v654_v31, %v653_v32 }
 0x8e0   :  { %656 = vst.msk [vmem:[#allocation2] sm:$0xff] %vm326_vm4, %v4140_v33  ;;  %658 = vrot.lane.b32.xlu1 %v4140_v33, %s3870_s18 }
 0x952   :  { %v659_v34 = vpop.permute.xlu1 %658 }
 0x953   :  { %3132 = vmatmul.mubr.msk.f32.vlgmr.msra.gmra.mrb[4].mxu1 %vm225_vm3, %v659_v34 }
 0x954   :  { %3483 = vmatpush3.bf16.msra.mxu1 %v4081_v52  ;;  %3142 = vmatprep.mubr.msk.f32.mxu1 %vm3866_vm0, %v3867_v4 }
 0x955   :  { %3484 = vmatprep.subr.bf16.mxu1 %v3865_v2 }
 0x958   :  { %3486 = vmatpush3.bf16.msra.mxu1 %v4084_v54 }
 0x959   :  { %3490 = vmatprep.subr.bf16.mxu1 %v3865_v2 }
 0xa26   :  { %v728_v35 = vpop.f32.mrb[4].mxu1 }
 0xa27   :  { %v729_v36 = vadd.f32 %v4092_v55, %v728_v35  ;;  %v3133_v37 = vpop.f32.mrb[5].mxu1 }
 0xa29   :  { %3684 = vtanh.f32 %v729_v36 }
 0xa33   :  { %v3685_v38 = vpop.eup %3684 }
 0xa34   :  { %3143 = vmatmul.mubr.msk.f32.vlgmr.msra.gmra.mrb[6].mxu1 %vm225_vm3, %v3685_v38 }
 0xa35   :  { %3492 = vmatpush3.bf16.msra.mxu1 %v4013_v9  ;;  %3168 = vmatprep.mubr.msk.f32.mxu1 %vm3866_vm0, %v3867_v4 }
 0xa36   :  { %3493 = vmatprep.subr.bf16.mxu1 %v3865_v2 }
 0xa39   :  { %3495 = vmatpush3.bf16.msra.mxu1 %v4018_v11 }
 0xa3a   :  { %3496 = vmatprep.subr.bf16.mxu1 %v3865_v2 }
 0xa3d   :  { %3498 = vmatpush3.bf16.msra.mxu1 %v4022_v14 }
 0xa3e   :  { %3499 = vmatprep.subr.bf16.mxu1 %v3865_v2 }
 0xa41   :  { %3501 = vmatpush3.bf16.msra.mxu1 %v4026_v17 }
 0xa42   :  { %3514 = vmatprep.subr.bf16.mxu1 %v3865_v2 }
 0xb07   :  { %v802_v40 = vpop.f32.mrb[6].mxu1 }
 0xb08   :  { %v803_v43 = vadd.f32 %v4109_v60, %v802_v40  ;;  %v3144_v44 = vpop.f32.mrb[7].mxu1 }
 0xb0a   :  { %v808_v45 = vmul.f32 %v807_v42, %v803_v43 }
 0xb0c   :  { %v4167_v46 = vadd.f32 %v808_v45, %v4113_v6 }
 0xb0e   :  { %3150 = vmatmul.mubr.msk.f32.vlgmr.msra.gmra.mrb[8].mxu0 %vm150_vm1, %v4167_v46 }
 0xb0f   :  { %3504 = vmatpush3.bf16.msra.mxu0 %v4060_v39  ;;  %3179 = vmatprep.mubr.msk.f32.mxu0 %vm3866_vm0, %v3867_v4 }
 0xb10   :  { %3505 = vmatprep.subr.bf16.mxu0 %v3865_v2 }
 0xb13   :  { %3507 = vmatpush3.bf16.msra.mxu0 %v4066_v41 }
 0xb14   :  { %3508 = vmatprep.subr.bf16.mxu0 %v3865_v2 }
 0xbe1   :  { %v884_v47 = vpop.f32.mrb[8].mxu0 }
 0xbe2   :  { %v885_v48 = vadd.f32 %v4034_v18, %v884_v47  ;;  %v3151_v49 = vpop.f32.mrb[9].mxu0 }
 0xbe4   :  { %3686 = vtanh.f32 %v885_v48 }
 0xbee   :  { %v3687_v50 = vpop.eup %3686 }
 0xbef   :  { %889 = vst.msk [vmem:[#allocation2] sm:$0xff] %vm225_vm3, %v3687_v50 }
 0xbf6   :  { %v890_v51 = vld [vmem:[#allocation2] sm:$0xff] }
 0xbf7   :  { %3169 = vmatmul.mubr.msk.f32.vlgmr.msra.gmra.mrb[8].mxu1 %vm148_vm2, %v890_v51 }
 0xbf8   :  { %3516 = vmatpush3.bf16.msra.mxu1 %v3998_v3  ;;  %3197 = vmatprep.mubr.msk.f32.mxu1 %vm3866_vm0, %v3867_v4 }
 0xbf9   :  { %3529 = vmatprep.subr.bf16.mxu1 %v3865_v2 }
 0xcca   :  { %v960_v53 = vpop.f32.mrb[8].mxu1 }
 0xccb   :  { %v961_v56 = vadd.f32 %v4046_v24, %v960_v53  ;;  %v3170_v57 = vpop.f32.mrb[9].mxu1 }
 0xccd   :  { %971 = vrot.lane.b32.xlu0 %v961_v56, %s3868_s25  ;;  %v2839_v58 = vmul.f32 -1.442695, %v961_v56 }
 0xccf   :  { %3688 = vpow2.f32 %v2839_v58 }
 0xcd9   :  { %v3689_v59 = vpop.eup %3688 }
 0xcda   :  { %v967_v61 = vadd.f32 1.0, %v3689_v59 }
 0xcdc   :  { %3690 = vrcp.f32 %v967_v61 }
 0xce6   :  { %v3691_v62 = vpop.eup %3690 }
 0xce7   :  { %v981_v7 = vsub.f32 1.0, %v3691_v62  ;;  %v987_v10 = vmul.f32 %v3691_v62, %v4140_v33 }
 0xd3f   :  { %v972_v63 = vpop.permute.xlu0 %971 }
 0xd40   :  { %v974_v0 = vmul.f32 %v3691_v62, %v972_v63 }
 0xd42   :  { %976 = vrot.lane.b32.xlu1 %v974_v0, %s3869_s27  ;;  %v1473_v0 = vstv %s2848_s4  ;;  %s3874_s4 = smov 112  }
 0xdb4   :  { %v977_v1 = vpop.permute.xlu1 %976 }
 0xdb5   :  { %v979_v6 = vadd.f32 %v977_v1, %v961_v56 }
 0xdb7   :  { %3692 = vtanh.f32 %v979_v6 }
 0xdc1   :  { %v3693_v5 = vpop.eup %3692 }
 0xdc2   :  { %983 = vrot.lane.b32.xlu0 %v3693_v5, %s3870_s18 }
 0xe34   :  { %v984_v8 = vpop.permute.xlu0 %983 }
 0xe35   :  { %v986_v12 = vmul.f32 %v984_v8, %v981_v7 }
 0xe37   :  { %v4189_v13 = vadd.f32 %v987_v10, %v986_v12 }
 0xe39   :  { %989 = vst.msk [vmem:[#allocation2] sm:$0xff] %vm326_vm4, %v4189_v13  ;;  %991 = vrot.lane.b32.xlu1 %v4189_v13, %s3870_s18 }
 0xeab   :  { %v992_v15 = vpop.permute.xlu1 %991 }
 0xeac   :  { %3180 = vmatmul.mubr.msk.f32.vlgmr.msra.gmra.mrb[10].mxu0 %vm225_vm3, %v992_v15 }
 0xead   :  { %3510 = vmatpush3.bf16.msra.mxu0 %v4081_v52  ;;  %3190 = vmatprep.mubr.msk.f32.mxu0 %vm3866_vm0, %v3867_v4 }
 0xeae   :  { %3511 = vmatprep.subr.bf16.mxu0 %v3865_v2 }
 0xeb1   :  { %3513 = vmatpush3.bf16.msra.mxu0 %v4084_v54 }
 0xeb2   :  { %3517 = vmatprep.subr.bf16.mxu0 %v3865_v2 }
 0xf7f   :  { %v1061_v16 = vpop.f32.mrb[10].mxu0 }
 0xf80   :  { %v1062_v19 = vadd.f32 %v4092_v55, %v1061_v16  ;;  %v3181_v20 = vpop.f32.mrb[11].mxu0 }
 0xf82   :  { %3694 = vtanh.f32 %v1062_v19 }
 0xf8c   :  { %v3695_v21 = vpop.eup %3694 }
 0xf8d   :  { %3191 = vmatmul.mubr.msk.f32.vlgmr.msra.gmra.mrb[12].mxu0 %vm225_vm3, %v3695_v21 }
 0xf8e   :  { %3519 = vmatpush3.bf16.msra.mxu0 %v4013_v9  ;;  %3216 = vmatprep.mubr.msk.f32.mxu0 %vm3866_vm0, %v3867_v4 }
 0xf8f   :  { %3520 = vmatprep.subr.bf16.mxu0 %v3865_v2 }
 0xf92   :  { %3522 = vmatpush3.bf16.msra.mxu0 %v4018_v11 }
 0xf93   :  { %3523 = vmatprep.subr.bf16.mxu0 %v3865_v2 }
 0xf96   :  { %3525 = vmatpush3.bf16.msra.mxu0 %v4022_v14 }
 0xf97   :  { %3526 = vmatprep.subr.bf16.mxu0 %v3865_v2 }
 0xf9a   :  { %3528 = vmatpush3.bf16.msra.mxu0 %v4026_v17 }
 0xf9b   :  { %3541 = vmatprep.subr.bf16.mxu0 %v3865_v2 }
0x1060   :  { %v1135_v22 = vpop.f32.mrb[12].mxu0 }
0x1061   :  { %v1136_v25 = vadd.f32 %v4109_v60, %v1135_v22  ;;  %v3192_v26 = vpop.f32.mrb[13].mxu0 }
0x1063   :  { %v1141_v27 = vmul.f32 %v1140_v23, %v1136_v25 }
0x1065   :  { %v4216_v28 = vadd.f32 %v1141_v27, %v4167_v46 }
0x1067   :  { %3198 = vmatmul.mubr.msk.f32.vlgmr.msra.gmra.mrb[10].mxu1 %vm150_vm1, %v4216_v28 }
0x1068   :  { %3531 = vmatpush3.bf16.msra.mxu1 %v4060_v39  ;;  %3227 = vmatprep.mubr.msk.f32.mxu1 %vm3866_vm0, %v3867_v4 }
0x1069   :  { %3532 = vmatprep.subr.bf16.mxu1 %v3865_v2 }
0x106c   :  { %3534 = vmatpush3.bf16.msra.mxu1 %v4066_v41 }
0x106d   :  { %3535 = vmatprep.subr.bf16.mxu1 %v3865_v2 }
0x113a   :  { %v1217_v29 = vpop.f32.mrb[10].mxu1 }
0x113b   :  { %v1218_v30 = vadd.f32 %v4034_v18, %v1217_v29  ;;  %v3199_v31 = vpop.f32.mrb[11].mxu1 }
0x113d   :  { %3696 = vtanh.f32 %v1218_v30 }
0x1147   :  { %v3697_v32 = vpop.eup %3696 }
0x1148   :  { %1222 = vst.msk [vmem:[#allocation2] sm:$0xff] %vm225_vm3, %v3697_v32 }
0x114f   :  { %v1223_v33 = vld [vmem:[#allocation2] sm:$0xff] }
0x1150   :  { %3217 = vmatmul.mubr.msk.f32.vlgmr.msra.gmra.mrb[14].mxu0 %vm148_vm2, %v1223_v33 }
0x1151   :  { %3543 = vmatpush3.bf16.msra.mxu0 %v3998_v3  ;;  %3245 = vmatprep.mubr.msk.f32.mxu0 %vm3866_vm0, %v3867_v4 }
0x1152   :  { %3556 = vmatprep.subr.bf16.mxu0 %v3865_v2 }
0x1223   :  { %v1293_v34 = vpop.f32.mrb[14].mxu0 }
0x1224   :  { %v1294_v35 = vadd.f32 %v4046_v24, %v1293_v34  ;;  %v3218_v36 = vpop.f32.mrb[15].mxu0 }
0x1226   :  { %1304 = vrot.lane.b32.xlu0 %v1294_v35, %s3868_s25  ;;  %v2845_v37 = vmul.f32 -1.442695, %v1294_v35 }
0x1228   :  { %3698 = vpow2.f32 %v2845_v37 }
0x1232   :  { %v3699_v38 = vpop.eup %3698 }
0x1233   :  { %v1300_v40 = vadd.f32 1.0, %v3699_v38 }
0x1235   :  { %3700 = vrcp.f32 %v1300_v40 }
0x123f   :  { %v3701_v42 = vpop.eup %3700 }
0x1240   :  { %v1314_v49 = vsub.f32 1.0, %v3701_v42  ;;  %v1320_v51 = vmul.f32 %v3701_v42, %v4189_v13 }
0x1298   :  { %v1305_v43 = vpop.permute.xlu0 %1304 }
0x1299   :  { %v1307_v44 = vmul.f32 %v3701_v42, %v1305_v43 }
0x129b   :  { %1309 = vrot.lane.b32.xlu1 %v1307_v44, %s3869_s27 }
0x130d   :  { %v1310_v45 = vpop.permute.xlu1 %1309 }
0x130e   :  { %v1312_v47 = vadd.f32 %v1310_v45, %v1294_v35  ;;  %v1806_v45 = vstv %s2854_s15 }
0x1310   :  { %3702 = vtanh.f32 %v1312_v47 }
0x131a   :  { %v3703_v48 = vpop.eup %3702 }
0x131b   :  { %1316 = vrot.lane.b32.xlu0 %v3703_v48, %s3870_s18 }
0x138d   :  { %v1317_v50 = vpop.permute.xlu0 %1316 }
0x138e   :  { %v1319_v53 = vmul.f32 %v1317_v50, %v1314_v49 }
0x1390   :  { %v4238_v56 = vadd.f32 %v1320_v51, %v1319_v53 }
0x1392   :  { %1322 = vst.msk [vmem:[#allocation2] sm:$0xff] %vm326_vm4, %v4238_v56  ;;  %1324 = vrot.lane.b32.xlu1 %v4238_v56, %s3870_s18 }
0x1404   :  { %v1325_v57 = vpop.permute.xlu1 %1324 }
0x1405   :  { %3228 = vmatmul.mubr.msk.f32.vlgmr.msra.gmra.mrb[12].mxu1 %vm225_vm3, %v1325_v57 }
0x1406   :  { %3537 = vmatpush3.bf16.msra.mxu1 %v4081_v52  ;;  %3238 = vmatprep.mubr.msk.f32.mxu1 %vm3866_vm0, %v3867_v4 }
0x1407   :  { %3538 = vmatprep.subr.bf16.mxu1 %v3865_v2 }
0x140a   :  { %3540 = vmatpush3.bf16.msra.mxu1 %v4084_v54 }
0x140b   :  { %3544 = vmatprep.subr.bf16.mxu1 %v3865_v2 }
0x14d8   :  { %v1394_v58 = vpop.f32.mrb[12].mxu1 }
0x14d9   :  { %v1395_v59 = vadd.f32 %v4092_v55, %v1394_v58  ;;  %v3229_v61 = vpop.f32.mrb[13].mxu1 }
0x14db   :  { %3704 = vtanh.f32 %v1395_v59 }
0x14e5   :  { %v3705_v62 = vpop.eup %3704 }
0x14e6   :  { %3239 = vmatmul.mubr.msk.f32.vlgmr.msra.gmra.mrb[14].mxu1 %vm225_vm3, %v3705_v62 }
0x14e7   :  { %3546 = vmatpush3.bf16.msra.mxu1 %v4013_v9  ;;  %3264 = vmatprep.mubr.msk.f32.mxu1 %vm3866_vm0, %v3867_v4 }
0x14e8   :  { %3547 = vmatprep.subr.bf16.mxu1 %v3865_v2 }
0x14eb   :  { %3549 = vmatpush3.bf16.msra.mxu1 %v4018_v11 }
0x14ec   :  { %3550 = vmatprep.subr.bf16.mxu1 %v3865_v2 }
0x14ef   :  { %3552 = vmatpush3.bf16.msra.mxu1 %v4022_v14 }
0x14f0   :  { %3553 = vmatprep.subr.bf16.mxu1 %v3865_v2 }
0x14f3   :  { %3555 = vmatpush3.bf16.msra.mxu1 %v4026_v17 }
0x14f4   :  { %3568 = vmatprep.subr.bf16.mxu1 %v3865_v2 }
0x15b9   :  { %v1468_v63 = vpop.f32.mrb[14].mxu1 }
0x15ba   :  { %v1469_v1 = vadd.f32 %v4109_v60, %v1468_v63  ;;  %v3240_v6 = vpop.f32.mrb[15].mxu1 }
0x15bc   :  { %v1474_v5 = vmul.f32 %v1473_v0, %v1469_v1 }
0x15be   :  { %v4265_v7 = vadd.f32 %v1474_v5, %v4216_v28 }
0x15c0   :  { %3246 = vmatmul.mubr.msk.f32.vlgmr.msra.gmra.mrb[16].mxu0 %vm150_vm1, %v4265_v7 }
0x15c1   :  { %3558 = vmatpush3.bf16.msra.mxu0 %v4060_v39  ;;  %3275 = vmatprep.mubr.msk.f32.mxu0 %vm3866_vm0, %v3867_v4 }
0x15c2   :  { %3559 = vmatprep.subr.bf16.mxu0 %v3865_v2 }
0x15c5   :  { %3561 = vmatpush3.bf16.msra.mxu0 %v4066_v41 }
0x15c6   :  { %3562 = vmatprep.subr.bf16.mxu0 %v3865_v2 }
0x1693   :  { %v1550_v8 = vpop.f32.mrb[16].mxu0 }
0x1694   :  { %v1551_v10 = vadd.f32 %v4034_v18, %v1550_v8  ;;  %v3247_v12 = vpop.f32.mrb[17].mxu0 }
0x1696   :  { %3706 = vtanh.f32 %v1551_v10 }
0x16a0   :  { %v3707_v13 = vpop.eup %3706 }
0x16a1   :  { %1555 = vst.msk [vmem:[#allocation2] sm:$0xff] %vm225_vm3, %v3707_v13 }
0x16a8   :  { %v1556_v15 = vld [vmem:[#allocation2] sm:$0xff] }
0x16a9   :  { %3265 = vmatmul.mubr.msk.f32.vlgmr.msra.gmra.mrb[16].mxu1 %vm148_vm2, %v1556_v15 }
0x16aa   :  { %3570 = vmatpush3.bf16.msra.mxu1 %v3998_v3  ;;  %3293 = vmatprep.mubr.msk.f32.mxu1 %vm3866_vm0, %v3867_v4 }
0x16ab   :  { %3583 = vmatprep.subr.bf16.mxu1 %v3865_v2 }
0x177c   :  { %v1626_v16 = vpop.f32.mrb[16].mxu1 }
0x177d   :  { %v1627_v19 = vadd.f32 %v4046_v24, %v1626_v16  ;;  %v3266_v20 = vpop.f32.mrb[17].mxu1 }
0x177f   :  { %1637 = vrot.lane.b32.xlu0 %v1627_v19, %s3868_s25  ;;  %v2851_v21 = vmul.f32 -1.442695, %v1627_v19 }
0x1781   :  { %3708 = vpow2.f32 %v2851_v21 }
0x178b   :  { %v3709_v22 = vpop.eup %3708 }
0x178c   :  { %v1633_v23 = vadd.f32 1.0, %v3709_v22 }
0x178e   :  { %3710 = vrcp.f32 %v1633_v23 }
0x1798   :  { %v3711_v25 = vpop.eup %3710 }
0x1799   :  { %v1647_v32 = vsub.f32 1.0, %v3711_v25  ;;  %v1653_v34 = vmul.f32 %v3711_v25, %v4238_v56 }
0x17f1   :  { %v1638_v26 = vpop.permute.xlu0 %1637 }
0x17f2   :  { %v1640_v27 = vmul.f32 %v3711_v25, %v1638_v26 }
0x17f4   :  { %1642 = vrot.lane.b32.xlu1 %v1640_v27, %s3869_s27 }
0x1866   :  { %v1643_v29 = vpop.permute.xlu1 %1642 }
0x1867   :  { %v1645_v30 = vadd.f32 %v1643_v29, %v1627_v19 }
0x1869   :  { %3712 = vtanh.f32 %v1645_v30  ;;  %v2139_v30 = vstv %s2860_s8 }
0x1873   :  { %v3713_v31 = vpop.eup %3712 }
0x1874   :  { %1649 = vrot.lane.b32.xlu0 %v3713_v31, %s3870_s18 }
0x18e6   :  { %v1650_v33 = vpop.permute.xlu0 %1649 }
0x18e7   :  { %v1652_v35 = vmul.f32 %v1650_v33, %v1647_v32 }
0x18e9   :  { %v4287_v36 = vadd.f32 %v1653_v34, %v1652_v35 }
0x18eb   :  { %1655 = vst.msk [vmem:[#allocation2] sm:$0xff] %vm326_vm4, %v4287_v36  ;;  %1657 = vrot.lane.b32.xlu1 %v4287_v36, %s3870_s18 }
0x195d   :  { %v1658_v37 = vpop.permute.xlu1 %1657 }
0x195e   :  { %3276 = vmatmul.mubr.msk.f32.vlgmr.msra.gmra.mrb[18].mxu0 %vm225_vm3, %v1658_v37 }
0x195f   :  { %3564 = vmatpush3.bf16.msra.mxu0 %v4081_v52  ;;  %3286 = vmatprep.mubr.msk.f32.mxu0 %vm3866_vm0, %v3867_v4 }
0x1960   :  { %3565 = vmatprep.subr.bf16.mxu0 %v3865_v2 }
0x1963   :  { %3567 = vmatpush3.bf16.msra.mxu0 %v4084_v54 }
0x1964   :  { %3571 = vmatprep.subr.bf16.mxu0 %v3865_v2 }
0x1a31   :  { %v1727_v38 = vpop.f32.mrb[18].mxu0 }
0x1a32   :  { %v1728_v40 = vadd.f32 %v4092_v55, %v1727_v38  ;;  %v3277_v42 = vpop.f32.mrb[19].mxu0 }
0x1a34   :  { %3714 = vtanh.f32 %v1728_v40 }
0x1a3e   :  { %v3715_v43 = vpop.eup %3714 }
0x1a3f   :  { %3287 = vmatmul.mubr.msk.f32.vlgmr.msra.gmra.mrb[20].mxu0 %vm225_vm3, %v3715_v43 }
0x1a40   :  { %3573 = vmatpush3.bf16.msra.mxu0 %v4013_v9  ;;  %3312 = vmatprep.mubr.msk.f32.mxu0 %vm3866_vm0, %v3867_v4 }
0x1a41   :  { %3574 = vmatprep.subr.bf16.mxu0 %v3865_v2 }
0x1a44   :  { %3576 = vmatpush3.bf16.msra.mxu0 %v4018_v11 }
0x1a45   :  { %3577 = vmatprep.subr.bf16.mxu0 %v3865_v2 }
0x1a48   :  { %3579 = vmatpush3.bf16.msra.mxu0 %v4022_v14 }
0x1a49   :  { %3580 = vmatprep.subr.bf16.mxu0 %v3865_v2 }
0x1a4c   :  { %3582 = vmatpush3.bf16.msra.mxu0 %v4026_v17 }
0x1a4d   :  { %3595 = vmatprep.subr.bf16.mxu0 %v3865_v2 }
0x1b12   :  { %v1801_v44 = vpop.f32.mrb[20].mxu0 }
0x1b13   :  { %v1802_v47 = vadd.f32 %v4109_v60, %v1801_v44  ;;  %v3288_v48 = vpop.f32.mrb[21].mxu0 }
0x1b15   :  { %v1807_v49 = vmul.f32 %v1806_v45, %v1802_v47 }
0x1b17   :  { %v4314_v50 = vadd.f32 %v1807_v49, %v4265_v7 }
0x1b19   :  { %3294 = vmatmul.mubr.msk.f32.vlgmr.msra.gmra.mrb[18].mxu1 %vm150_vm1, %v4314_v50 }
0x1b1a   :  { %3585 = vmatpush3.bf16.msra.mxu1 %v4060_v39  ;;  %3323 = vmatprep.mubr.msk.f32.mxu1 %vm3866_vm0, %v3867_v4 }
0x1b1b   :  { %3586 = vmatprep.subr.bf16.mxu1 %v3865_v2 }
0x1b1e   :  { %3588 = vmatpush3.bf16.msra.mxu1 %v4066_v41 }
0x1b1f   :  { %3589 = vmatprep.subr.bf16.mxu1 %v3865_v2 }
0x1bec   :  { %v1883_v51 = vpop.f32.mrb[18].mxu1 }
0x1bed   :  { %v1884_v53 = vadd.f32 %v4034_v18, %v1883_v51  ;;  %v3295_v56 = vpop.f32.mrb[19].mxu1 }
0x1bef   :  { %3716 = vtanh.f32 %v1884_v53 }
0x1bf9   :  { %v3717_v57 = vpop.eup %3716 }
0x1bfa   :  { %1888 = vst.msk [vmem:[#allocation2] sm:$0xff] %vm225_vm3, %v3717_v57 }
0x1c01   :  { %v1889_v58 = vld [vmem:[#allocation2] sm:$0xff] }
0x1c02   :  { %3313 = vmatmul.mubr.msk.f32.vlgmr.msra.gmra.mrb[22].mxu0 %vm148_vm2, %v1889_v58 }
0x1c03   :  { %3597 = vmatpush3.bf16.msra.mxu0 %v3998_v3  ;;  %3341 = vmatprep.mubr.msk.f32.mxu0 %vm3866_vm0, %v3867_v4 }
0x1c04   :  { %3610 = vmatprep.subr.bf16.mxu0 %v3865_v2 }
0x1cd5   :  { %v1959_v59 = vpop.f32.mrb[22].mxu0 }
0x1cd6   :  { %v1960_v61 = vadd.f32 %v4046_v24, %v1959_v59  ;;  %v3314_v62 = vpop.f32.mrb[23].mxu0 }
0x1cd8   :  { %1970 = vrot.lane.b32.xlu0 %v1960_v61, %s3868_s25  ;;  %v2857_v63 = vmul.f32 -1.442695, %v1960_v61 }
0x1cda   :  { %3718 = vpow2.f32 %v2857_v63 }
0x1ce4   :  { %v3719_v0 = vpop.eup %3718 }
0x1ce5   :  { %v1966_v1 = vadd.f32 1.0, %v3719_v0 }
0x1ce7   :  { %3720 = vrcp.f32 %v1966_v1 }
0x1cf1   :  { %v3721_v6 = vpop.eup %3720 }
0x1cf2   :  { %v1980_v15 = vsub.f32 1.0, %v3721_v6  ;;  %v1986_v19 = vmul.f32 %v3721_v6, %v4287_v36 }
0x1d4a   :  { %v1971_v5 = vpop.permute.xlu0 %1970 }
0x1d4b   :  { %v1973_v8 = vmul.f32 %v3721_v6, %v1971_v5  ;;  %v2472_v5 = vstv %s2866_s0 }
0x1d4d   :  { %1975 = vrot.lane.b32.xlu1 %v1973_v8, %s3869_s27 }
0x1dbf   :  { %v1976_v10 = vpop.permute.xlu1 %1975 }
0x1dc0   :  { %v1978_v12 = vadd.f32 %v1976_v10, %v1960_v61 }
0x1dc2   :  { %3722 = vtanh.f32 %v1978_v12 }
0x1dcc   :  { %v3723_v13 = vpop.eup %3722 }
0x1dcd   :  { %1982 = vrot.lane.b32.xlu0 %v3723_v13, %s3870_s18 }
0x1e3f   :  { %v1983_v16 = vpop.permute.xlu0 %1982 }
0x1e40   :  { %v1985_v20 = vmul.f32 %v1983_v16, %v1980_v15 }
0x1e42   :  { %v4336_v21 = vadd.f32 %v1986_v19, %v1985_v20 }
0x1e44   :  { %1988 = vst.msk [vmem:[#allocation2] sm:$0xff] %vm326_vm4, %v4336_v21  ;;  %1990 = vrot.lane.b32.xlu1 %v4336_v21, %s3870_s18 }
0x1eb6   :  { %v1991_v22 = vpop.permute.xlu1 %1990 }
0x1eb7   :  { %3324 = vmatmul.mubr.msk.f32.vlgmr.msra.gmra.mrb[20].mxu1 %vm225_vm3, %v1991_v22 }
0x1eb8   :  { %3591 = vmatpush3.bf16.msra.mxu1 %v4081_v52  ;;  %3334 = vmatprep.mubr.msk.f32.mxu1 %vm3866_vm0, %v3867_v4 }
0x1eb9   :  { %3592 = vmatprep.subr.bf16.mxu1 %v3865_v2 }
0x1ebc   :  { %3594 = vmatpush3.bf16.msra.mxu1 %v4084_v54 }
0x1ebd   :  { %3598 = vmatprep.subr.bf16.mxu1 %v3865_v2 }
0x1f8a   :  { %v2060_v23 = vpop.f32.mrb[20].mxu1 }
0x1f8b   :  { %v2061_v25 = vadd.f32 %v4092_v55, %v2060_v23  ;;  %v3325_v26 = vpop.f32.mrb[21].mxu1 }
0x1f8d   :  { %3724 = vtanh.f32 %v2061_v25 }
0x1f97   :  { %v3725_v27 = vpop.eup %3724 }
0x1f98   :  { %3335 = vmatmul.mubr.msk.f32.vlgmr.msra.gmra.mrb[22].mxu1 %vm225_vm3, %v3725_v27 }
0x1f99   :  { %3600 = vmatpush3.bf16.msra.mxu1 %v4013_v9  ;;  %3360 = vmatprep.mubr.msk.f32.mxu1 %vm3866_vm0, %v3867_v4 }
0x1f9a   :  { %3601 = vmatprep.subr.bf16.mxu1 %v3865_v2 }
0x1f9d   :  { %3603 = vmatpush3.bf16.msra.mxu1 %v4018_v11 }
0x1f9e   :  { %3604 = vmatprep.subr.bf16.mxu1 %v3865_v2 }
0x1fa1   :  { %3606 = vmatpush3.bf16.msra.mxu1 %v4022_v14 }
0x1fa2   :  { %3607 = vmatprep.subr.bf16.mxu1 %v3865_v2 }
0x1fa5   :  { %3609 = vmatpush3.bf16.msra.mxu1 %v4026_v17 }
0x1fa6   :  { %3622 = vmatprep.subr.bf16.mxu1 %v3865_v2 }
0x206b   :  { %v2134_v29 = vpop.f32.mrb[22].mxu1 }
0x206c   :  { %v2135_v31 = vadd.f32 %v4109_v60, %v2134_v29  ;;  %v3336_v32 = vpop.f32.mrb[23].mxu1 }
0x206e   :  { %v2140_v33 = vmul.f32 %v2139_v30, %v2135_v31 }
0x2070   :  { %v4363_v34 = vadd.f32 %v2140_v33, %v4314_v50 }
0x2072   :  { %3342 = vmatmul.mubr.msk.f32.vlgmr.msra.gmra.mrb[24].mxu0 %vm150_vm1, %v4363_v34 }
0x2073   :  { %3612 = vmatpush3.bf16.msra.mxu0 %v4060_v39  ;;  %3371 = vmatprep.mubr.msk.f32.mxu0 %vm3866_vm0, %v3867_v4 }
0x2074   :  { %3613 = vmatprep.subr.bf16.mxu0 %v3865_v2 }
0x2077   :  { %3615 = vmatpush3.bf16.msra.mxu0 %v4066_v41 }
0x2078   :  { %3616 = vmatprep.subr.bf16.mxu0 %v3865_v2 }
0x2145   :  { %v2216_v35 = vpop.f32.mrb[24].mxu0 }
0x2146   :  { %v2217_v36 = vadd.f32 %v4034_v18, %v2216_v35  ;;  %v3343_v37 = vpop.f32.mrb[25].mxu0 }
0x2148   :  { %3726 = vtanh.f32 %v2217_v36 }
0x2152   :  { %v3727_v38 = vpop.eup %3726 }
0x2153   :  { %2221 = vst.msk [vmem:[#allocation2] sm:$0xff] %vm225_vm3, %v3727_v38 }
0x215a   :  { %v2222_v40 = vld [vmem:[#allocation2] sm:$0xff] }
0x215b   :  { %3361 = vmatmul.mubr.msk.f32.vlgmr.msra.gmra.mrb[24].mxu1 %vm148_vm2, %v2222_v40 }
0x215c   :  { %3624 = vmatpush3.bf16.msra.mxu1 %v3998_v3  ;;  %3389 = vmatprep.mubr.msk.f32.mxu1 %vm3866_vm0, %v3867_v4 }
0x215d   :  { %3637 = vmatprep.subr.bf16.mxu1 %v3865_v2 }
0x222e   :  { %v2292_v42 = vpop.f32.mrb[24].mxu1 }
0x222f   :  { %v2293_v43 = vadd.f32 %v4046_v24, %v2292_v42  ;;  %v3362_v44 = vpop.f32.mrb[25].mxu1 }
0x2230   :  { %v3749_v44 = vld [vmem:[%s4488_s9] ss:$0 sm:$0xff] }
0x2231   :  { %2303 = vrot.lane.b32.xlu0 %v2293_v43, %s3868_s25  ;;  %v2863_v18 = vmul.f32 -1.442695, %v2293_v43 }
0x2233   :  { %3728 = vpow2.f32 %v2863_v18 }
0x223d   :  { %v3729_v45 = vpop.eup %3728 }
0x223e   :  { %v2299_v47 = vadd.f32 1.0, %v3729_v45 }
0x2240   :  { %3730 = vrcp.f32 %v2299_v47 }
0x224a   :  { %v3731_v48 = vpop.eup %3730 }
0x224b   :  { %v2313_v24 = vsub.f32 1.0, %v3731_v48  ;;  %v2319_v58 = vmul.f32 %v3731_v48, %v4336_v21 }
0x22a3   :  { %v2304_v49 = vpop.permute.xlu0 %2303 }
0x22a4   :  { %v2306_v51 = vmul.f32 %v3731_v48, %v2304_v49 }
0x22a6   :  { %2308 = vrot.lane.b32.xlu1 %v2306_v51, %s3869_s27 }
0x2318   :  { %v2309_v3 = vpop.permute.xlu1 %2308 }
0x2319   :  { %v2311_v53 = vadd.f32 %v2309_v3, %v2293_v43  ;;  %v2805_v43 = vstv %s2872_s17 }
0x231b   :  { %3732 = vtanh.f32 %v2311_v53 }
0x2325   :  { %v3733_v56 = vpop.eup %3732 }
0x2326   :  { %2315 = vrot.lane.b32.xlu0 %v3733_v56, %s3870_s18 }
0x2398   :  { %v2316_v57 = vpop.permute.xlu0 %2315 }
0x2399   :  { %v2318_v59 = vmul.f32 %v2316_v57, %v2313_v24 }
0x239b   :  { %v4385_v61 = vadd.f32 %v2319_v58, %v2318_v59 }
0x239d   :  { %2321 = vst.msk [vmem:[#allocation2] sm:$0xff] %vm326_vm4, %v4385_v61  ;;  %2323 = vrot.lane.b32.xlu1 %v4385_v61, %s3870_s18 }
0x240f   :  { %v2324_v62 = vpop.permute.xlu1 %2323 }
0x2410   :  { %3372 = vmatmul.mubr.msk.f32.vlgmr.msra.gmra.mrb[26].mxu0 %vm225_vm3, %v2324_v62 }
0x2411   :  { %3618 = vmatpush3.bf16.msra.mxu0 %v4081_v52  ;;  %3382 = vmatprep.mubr.msk.f32.mxu0 %vm3866_vm0, %v3867_v4 }
0x2412   :  { %3619 = vmatprep.subr.bf16.mxu0 %v3865_v2 }
0x2415   :  { %3621 = vmatpush3.bf16.msra.mxu0 %v4084_v54 }
0x2416   :  { %3625 = vmatprep.subr.bf16.mxu0 %v3865_v2 }
0x24e3   :  { %v2393_v63 = vpop.f32.mrb[26].mxu0 }
0x24e4   :  { %v2394_v0 = vadd.f32 %v4092_v55, %v2393_v63  ;;  %v3373_v1 = vpop.f32.mrb[27].mxu0 }
0x24e6   :  { %3734 = vtanh.f32 %v2394_v0 }
0x24f0   :  { %v3735_v6 = vpop.eup %3734 }
0x24f1   :  { %3383 = vmatmul.mubr.msk.f32.vlgmr.msra.gmra.mrb[28].mxu0 %vm225_vm3, %v3735_v6 }
0x24f2   :  { %3627 = vmatpush3.bf16.msra.mxu0 %v4013_v9  ;;  %3408 = vmatprep.mubr.msk.f32.mxu0 %vm3866_vm0, %v3867_v4 }
0x24f3   :  { %3628 = vmatprep.subr.bf16.mxu0 %v3865_v2 }
0x24f6   :  { %3630 = vmatpush3.bf16.msra.mxu0 %v4018_v11 }
0x24f7   :  { %3631 = vmatprep.subr.bf16.mxu0 %v3865_v2 }
0x24fa   :  { %3633 = vmatpush3.bf16.msra.mxu0 %v4022_v14  ;;  %v3746_v14 = vld [vmem:[%s4482_s3] ss:$0 sm:$0xff]  ;;  %s3871_s3 = smov 16  }
0x24fb   :  { %3634 = vmatprep.subr.bf16.mxu0 %v3865_v2 }
0x24fe   :  { %3636 = vmatpush3.bf16.msra.mxu0 %v4026_v17 }
0x25c4   :  { %v2467_v55 = vpop.f32.mrb[28].mxu0 }
0x25c5   :  { %v2468_v9 = vadd.f32 %v4109_v60, %v2467_v55  ;;  %v3384_v8 = vpop.f32.mrb[29].mxu0 }
0x25c7   :  { %v2473_v10 = vmul.f32 %v2472_v5, %v2468_v9 }
0x25c9   :  { %v4411_v12 = vadd.f32 %v2473_v10, %v4363_v34 }
0x25cb   :  { %3390 = vmatmul.mubr.msk.f32.vlgmr.msra.gmra.mrb[26].mxu1 %vm150_vm1, %v4411_v12 }
0x25cc   :  { %3639 = vmatpush3.bf16.msra.mxu1 %v4060_v39  ;;  %3419 = vmatprep.mubr.msk.f32.mxu1 %vm3866_vm0, %v3867_v4 }
0x25cd   :  { %3640 = vmatprep.subr.bf16.mxu1 %v3865_v2 }
0x25d0   :  { %3642 = vmatpush3.bf16.msra.mxu1 %v4066_v41  ;;  %v3747_v41 = vld [vmem:[%s4484_s5] ss:$0 sm:$0xff]  ;;  %s3872_s5 = smov 48  }
0x25d1   :  { %3643 = vmatprep.subr.bf16.mxu1 %v3865_v2 }
0x269e   :  { %v2549_v11 = vpop.f32.mrb[26].mxu1 }
0x269f   :  { %v2550_v17 = vadd.f32 %v3746_v14, %v2549_v11  ;;  %v3391_v60 = vpop.f32.mrb[27].mxu1 }
0x26a1   :  { %3736 = vtanh.f32 %v2550_v17 }
0x26ab   :  { %v3737_v13 = vpop.eup %3736 }
0x26ac   :  { %2554 = vst.msk [vmem:[#allocation2] sm:$0xff] %vm225_vm3, %v3737_v13 }
0x26b3   :  { %v2555_v39 = vld [vmem:[#allocation2] sm:$0xff] }
0x26b4   :  { %3409 = vmatmul.mubr.msk.f32.vlgmr.msra.gmra.mrb[30].mxu0 %vm148_vm2, %v2555_v39 }
0x2787   :  { %v2625_v15 = vpop.f32.mrb[30].mxu0 }
0x2788   :  { %v2626_v16 = vadd.f32 %v3747_v41, %v2625_v15  ;;  %v3410_v19 = vpop.f32.mrb[31].mxu0 }
0x278a   :  { %2636 = vrot.lane.b32.xlu0 %v2626_v16, %s3868_s25  ;;  %v2869_v20 = vmul.f32 -1.442695, %v2626_v16 }
0x278c   :  { %3738 = vpow2.f32 %v2869_v20 }
0x2796   :  { %v3739_v21 = vpop.eup %3738 }
0x2797   :  { %v2632_v22 = vadd.f32 1.0, %v3739_v21 }
0x2799   :  { %3740 = vrcp.f32 %v2632_v22 }
0x27a3   :  { %v3741_v23 = vpop.eup %3740 }
0x27a4   :  { %v2646_v31 = vsub.f32 1.0, %v3741_v23  ;;  %v2652_v33 = vmul.f32 %v3741_v23, %v4385_v61 }
0x27fc   :  { %v2637_v25 = vpop.permute.xlu0 %2636 }
0x27fd   :  { %v2639_v26 = vmul.f32 %v3741_v23, %v2637_v25 }
0x27ff   :  { %2641 = vrot.lane.b32.xlu1 %v2639_v26, %s3869_s27 }
0x2871   :  { %v2642_v27 = vpop.permute.xlu1 %2641 }
0x2872   :  { %v2644_v29 = vadd.f32 %v2642_v27, %v2626_v16 }
0x2874   :  { %3742 = vtanh.f32 %v2644_v29 }
0x287e   :  { %v3743_v30 = vpop.eup %3742 }
0x287f   :  { %2648 = vrot.lane.b32.xlu0 %v3743_v30, %s3870_s18 }
0x2883   :  { %811 = vrot.lane.b32.xlu0 %v4167_v46, %s3871_s3 }
0x2887   :  { %1477 = vrot.lane.b32.xlu0 %v4265_v7, %s3872_s5 }
0x288b   :  { %2143 = vrot.lane.b32.xlu0 %v4363_v34, %s3873_s30 }
0x28f1   :  { %v2649_v32 = vpop.permute.xlu0 %2648 }
0x28f2   :  { %v2651_v35 = vmul.f32 %v2649_v32, %v2646_v31 }
0x28f4   :  { %v2653_v36 = vadd.f32 %v2652_v33, %v2651_v35 }
0x28f5   :  { %v812_v37 = vpop.permute.xlu0 %811 }
0x28f6   :  { %2654 = vst.msk [vmem:[#allocation2] sm:$0xff] %vm326_vm4, %v2653_v36  ;;  %2656 = vrot.lane.b32.xlu1 %v2653_v36, %s3870_s18 }
0x28f7   :  { %815 = vst.msk [vmem:[%s4489_s10] sm:$0xff] %vm814_vm5, %v812_v37 }
0x28f9   :  { %v1478_v7 = vpop.permute.xlu0 %1477 }
0x28fa   :  { %1144 = vrot.lane.b32.xlu1 %v4216_v28, %s3868_s25 }
0x28fe   :  { %1810 = vrot.lane.b32.xlu1 %v4314_v50, %s3869_s27  ;;  %v2144_v50 = vpop.permute.xlu0 %2143 }
0x2902   :  { %2476 = vrot.lane.b32.xlu1 %v4411_v12, %s3870_s18 }
0x2968   :  { %v2657_v46 = vpop.permute.xlu1 %2656 }
0x2969   :  { %3420 = vmatmul.mubr.msk.f32.vlgmr.msra.gmra.mrb[28].mxu1 %vm225_vm3, %v2657_v46 }
0x296a   :  { %3645 = vmatpush3.bf16.msra.mxu1 %v4081_v52  ;;  %3430 = vmatprep.mubr.msk.f32.mxu1 %vm3866_vm0, %v3867_v4 }
0x296b   :  { %3646 = vmatprep.subr.bf16.mxu1 %v3865_v2 }
0x296c   :  { %v1145_v28 = vpop.permute.xlu1 %1144 }
0x296d   :  { %1148 = vst.msk [vmem:[%s4489_s10] sm:$0xff] %vm1147_vm6, %v1145_v28 }
0x296e   :  { %1481 = vst.msk [vmem:[%s4489_s10] sm:$0xff] %vm1480_vm7, %v1478_v7  ;;  %3648 = vmatpush3.bf16.msra.mxu1 %v4084_v54  ;;  %v3748_v54 = vld [vmem:[%s4486_s7] ss:$0 sm:$0xff] }
0x2970   :  { %v1811_v52 = vpop.permute.xlu1 %1810 }
0x2971   :  { %1814 = vst.msk [vmem:[%s4489_s10] sm:$0xff] %vm1813_vm8, %v1811_v52 }
0x2972   :  { %2147 = vst.msk [vmem:[%s4489_s10] sm:$0xff] %vm2146_vm9, %v2144_v50 }
0x2974   :  { %v2477_v2 = vpop.permute.xlu1 %2476 }
0x2975   :  { %2480 = vst.msk [vmem:[%s4489_s10] sm:$0xff] %vm2479_vm10, %v2477_v2 }
0x2a3c   :  { %v2726_v4 = vpop.f32.mrb[28].mxu1 }
0x2a3d   :  { %v2727_v34 = vadd.f32 %v3748_v54, %v2726_v4  ;;  %v3421_v38 = vpop.f32.mrb[29].mxu1 }
0x2a3f   :  { %3744 = vtanh.f32 %v2727_v34 }
0x2a49   :  { %v3745_v40 = vpop.eup %3744 }
0x2a4a   :  { %3431 = vmatmul.mubr.msk.f32.vlgmr.msra.gmra.mrb[30].mxu1 %vm225_vm3, %v3745_v40 }
0x2b1d   :  { %v2800_v42 = vpop.f32.mrb[30].mxu1 }
0x2b1e   :  { %v2801_v18 = vadd.f32 %v3749_v44, %v2800_v42  ;;  %v3432_v45 = vpop.f32.mrb[31].mxu1 }
0x2b20   :  { %v2806_v47 = vmul.f32 %v2805_v43, %v2801_v18 }
0x2b22   :  { %v2807_v48 = vadd.f32 %v2806_v47, %v4411_v12 }
0x2b24   :  { %2809 = vrot.lane.b32.xlu0 %v2807_v48, %s3874_s4 }
0x2b96   :  { %v2810_v49 = vpop.permute.xlu0 %2809 }
0x2b97   :  { %2813 = vst.msk [vmem:[%s4489_s10] sm:$0xff] %vm2812_vm11, %v2810_v49 }
0x2b98   :  { %2818 = vsyncpa [#allocation4], 1 }
0x2b99   :  { %2819 = vsyncpa [#allocation8], 1 }
0x2b9a   :  { %2820 = vsyncpa [#allocation11], 1 }
0x2b9b   :  { %2821 = vsyncpa [#allocation5], 1 }

</bundles_post_ra>
